<compile_context>
chip_gen: v7x
topology: tpu7x:2x2x1
jax: 0.10.0
libtpu: 0.0.40
codegen_flags: <defaults>
</compile_context>

<pallas_src>
import jax
import jax.numpy as jnp
from jax.experimental import pallas as pl
from jax.experimental.pallas import tpu as pltpu

PROJ_HIDDEN = 2048  # fixed by the module definition


def _round_up(x, m):
    return (x + m - 1) // m * m


# ---------------------------------------------------------------------------
# Kernel bodies
# ---------------------------------------------------------------------------

def _projector_kernel_resident(x_ref, w1_ref, b1_ref, w2_ref, b2_ref, o_ref,
                               h_ref):
    # 1-D grid over row tiles; all weights resident in VMEM.
    #   x_ref : (tm, Dip)     bf16
    #   w1_ref: (Dip, 2048)   bf16, grid-constant, single-buffered
    #   b1_ref: (1, 2048)     f32,  grid-constant
    #   w2_ref: (2048, Dop)   bf16, grid-constant, single-buffered
    #   b2_ref: (1, Dop)      f32,  grid-constant
    #   o_ref : (tm, Dop)
    #   h_ref : (tm, 2048)    bf16 scratch (intentionally bf16; see header)
    h = jnp.dot(x_ref[...], w1_ref[...], preferred_element_type=jnp.float32)
    h = jnp.maximum(h + b1_ref[...], 0.0)            # f32 epilogue
    h_ref[...] = h.astype(h_ref.dtype)

    y = jnp.dot(h_ref[...], w2_ref[...], preferred_element_type=jnp.float32)
    o_ref[...] = (y + b2_ref[...]).astype(o_ref.dtype)


def _projector_kernel_streamed(x_ref, w1_ref, b1_ref, w2_ref, b2_ref, o_ref,
                               h_ref):
    # Fallback: 2-D grid (row tiles i, output-column tiles j); W2/b2 streamed
    # over j.  h = ReLU(x@W1 + b1) is computed once per row tile (j == 0) into
    # a persistent VMEM scratch and reused across all j.  NOTE: this reuse is
    # only correct because j is the minor, sequential ("arbitrary") grid axis.
    @pl.when(pl.program_id(1) == 0)
    def _():
        h = jnp.dot(x_ref[...], w1_ref[...],
                    preferred_element_type=jnp.float32)
        h = jnp.maximum(h + b1_ref[...], 0.0)
        h_ref[...] = h.astype(h_ref.dtype)

    y = jnp.dot(h_ref[...], w2_ref[...], preferred_element_type=jnp.float32)
    o_ref[...] = (y + b2_ref[...]).astype(o_ref.dtype)


# ---------------------------------------------------------------------------
# Host-side wrappers
# ---------------------------------------------------------------------------

def prepare_projector_params(w1, b1, w2, b2, *, compute_dtype=jnp.bfloat16):
    """Cast/pad the weights once (hoisted out of the per-call hot path)."""
    D_in, D_hid = w1.shape
    D_out = w2.shape[1]
    assert D_hid == PROJ_HIDDEN and w2.shape[0] == PROJ_HIDDEN
    Dip = _round_up(D_in, 128)     # lane-dense contraction dim for matmul #1
    Dop = _round_up(D_out, 128)    # lane-dense output dim (unmasked vst)
    return {
        "w1": jnp.pad(w1.astype(compute_dtype), ((0, Dip - D_in), (0, 0))),
        "b1": b1.reshape(1, D_hid).astype(jnp.float32),
        "w2": jnp.pad(w2.astype(compute_dtype), ((0, 0), (0, Dop - D_out))),
        "b2": jnp.pad(b2.reshape(1, D_out).astype(jnp.float32),
                      ((0, 0), (0, Dop - D_out))),
        "d_in": D_in,
        "d_out": D_out,
        "compute_dtype": compute_dtype,
    }


def _vmem_capacity_bytes():
    try:
        return int(pltpu.get_tpu_info().vmem_capacity_bytes)
    except Exception:
        return 64 * 1024 * 1024   # conservative: v7x per-TensorCore VMEM


def projector_forward(x, params, *, tm=512, tn=1024, out_dtype=None):
    """x: (B, T, enc_hidden) -> (B, T, llm_hidden).

    `params` must come from prepare_projector_params().  Pass
    out_dtype=jnp.bfloat16 if the downstream LLM consumes bf16 (halves output
    VMEM + HBM writes); default inherits x.dtype.
    """
    B, T, D_in = x.shape
    assert D_in == params["d_in"]
    w1p, b1p, w2p, b2p = params["w1"], params["b1"], params["w2"], params["b2"]
    compute_dtype = params["compute_dtype"]
    D_out = params["d_out"]
    Dip, D_hid = w1p.shape
    Dop = w2p.shape[1]
    out_dtype = x.dtype if out_dtype is None else out_dtype

    cb = jnp.dtype(compute_dtype).itemsize
    ob = jnp.dtype(out_dtype).itemsize

    M = B * T
    # Keep >= 2 row tiles whenever possible so the "parallel" row axis can
    # shard across both v7x TensorCores (harmless on single-TC v5e/v6e).
    if M <= tm:
        tm = max(8, _round_up(-(-M // 2), 8))
    Mp = _round_up(M, tm)
    n_row_tiles = Mp // tm

    x2d = jnp.pad(x.reshape(M, D_in).astype(compute_dtype),
                  ((0, Mp - M), (0, Dip - D_in)))

    vmem_cap = _vmem_capacity_bytes()

    # ---- Decide: resident W2 (collapse j axis) vs. streamed W2 -------------
    resident_bytes = (2 * tm * Dip * cb        # x tile, double-buffered
                      + Dip * D_hid * cb       # W1, single-buffered
                      + D_hid * 4              # b1
                      + D_hid * Dop * cb       # W2, single-buffered
                      + Dop * 4                # b2
                      + 2 * tm * Dop * ob      # out tile, double-buffered
                      + tm * D_hid * cb)       # h scratch (bf16)
    use_resident = resident_bytes <= int(0.8 * vmem_cap)

    if use_resident:
        working_set = resident_bytes
        w2_hbm_traffic = D_hid * Dop * cb + Dop * 4          # read once
        grid = (n_row_tiles,)
    else:
        # Streamed fallback for very large llm_hidden: pick the largest
        # tn <= 1024 (multiple of 128) that divides the padded output dim.
        tn_eff = min(tn, Dop)
        while Dop % tn_eff:
            tn_eff -= 128
        working_set = (2 * tm * Dip * cb + Dip * D_hid * cb + D_hid * 4
                       + 2 * D_hid * tn_eff * cb + 2 * tn_eff * 4
                       + 2 * tm * tn_eff * ob + tm * D_hid * cb)
        w2_hbm_traffic = (D_hid * Dop * cb + Dop * 4) * n_row_tiles
        grid = (n_row_tiles, Dop // tn_eff)

    # VMEM limit: actual working set +30% (with a floor for compiler-internal
    # scratch), capped at 85% of the physical per-core VMEM.
    vmem_limit = min(int(0.85 * vmem_cap),
                     max(int(working_set * 1.3), 24 * 1024 * 1024))

    cost = pl.CostEstimate(
        flops=int(2 * Mp * Dip * D_hid + 2 * Mp * D_hid * Dop),
        transcendentals=0,
        bytes_accessed=int(Mp * Dip * cb + Dip * D_hid * cb + D_hid * 4
                           + w2_hbm_traffic + Mp * Dop * ob),
    )

    if use_resident:
        out2d = pl.pallas_call(
            _projector_kernel_resident,
            out_shape=jax.ShapeDtypeStruct((Mp, Dop), out_dtype),
            grid_spec=pltpu.PrefetchScalarGridSpec(
                num_scalar_prefetch=0,
                grid=grid,
                in_specs=[
                    # x row tile varies with i.
                    pl.BlockSpec((tm, Dip), lambda i: (i, 0)),
                    # Grid-constant weights/biases: single-buffered, DMA'd once.
                    pl.BlockSpec((Dip, D_hid), lambda i: (0, 0),
                                 pipeline_mode=pl.Buffered(buffer_count=1)),
                    pl.BlockSpec((1, D_hid), lambda i: (0, 0),
                                 pipeline_mode=pl.Buffered(buffer_count=1)),
                    pl.BlockSpec((D_hid, Dop), lambda i: (0, 0),
                                 pipeline_mode=pl.Buffered(buffer_count=1)),
                    pl.BlockSpec((1, Dop), lambda i: (0, 0),
                                 pipeline_mode=pl.Buffered(buffer_count=1)),
                ],
                out_specs=pl.BlockSpec((tm, Dop), lambda i: (i, 0)),
                scratch_shapes=[pltpu.VMEM((tm, D_hid), compute_dtype)],
            ),
            compiler_params=pltpu.CompilerParams(
                dimension_semantics=("parallel",),
                vmem_limit_bytes=vmem_limit,
            ),
            cost_estimate=cost,
        )(x2d, w1p, b1p, w2p, b2p)
    else:
        out2d = pl.pallas_call(
            _projector_kernel_streamed,
            out_shape=jax.ShapeDtypeStruct((Mp, Dop), out_dtype),
            grid_spec=pltpu.PrefetchScalarGridSpec(
                num_scalar_prefetch=0,
                grid=grid,
                in_specs=[
                    pl.BlockSpec((tm, Dip), lambda i, j: (i, 0)),
                    pl.BlockSpec((Dip, D_hid), lambda i, j: (0, 0),
                                 pipeline_mode=pl.Buffered(buffer_count=1)),
                    pl.BlockSpec((1, D_hid), lambda i, j: (0, 0),
                                 pipeline_mode=pl.Buffered(buffer_count=1)),
                    # W2 / b2 streamed over the output-column axis (b2 is a
                    # tiny 4*tn-byte DMA per step; it disappears entirely in
                    # the resident path above).
                    pl.BlockSpec((D_hid, tn_eff), lambda i, j: (0, j)),
                    pl.BlockSpec((1, tn_eff), lambda i, j: (0, j)),
                ],
                out_specs=pl.BlockSpec((tm, tn_eff), lambda i, j: (i, j)),
                scratch_shapes=[pltpu.VMEM((tm, D_hid), compute_dtype)],
            ),
            compiler_params=pltpu.CompilerParams(
                dimension_semantics=("parallel", "arbitrary"),
                vmem_limit_bytes=vmem_limit,
            ),
            cost_estimate=cost,
        )(x2d, w1p, b1p, w2p, b2p)

    return out2d[:M, :D_out].reshape(B, T, D_out)


def init_projector_params(key, speech_encoder_hidden_size, llm_hidden_size,
                          dtype=jnp.float32):
    """Deterministic init mirroring nn.Linear default (uniform +-1/sqrt(fan_in))."""
    k1, k2, k3, k4 = jax.random.split(key, 4)
    bound1 = 1.0 / jnp.sqrt(speech_encoder_hidden_size)
    bound2 = 1.0 / jnp.sqrt(PROJ_HIDDEN)
    # Stored already transposed to (in, out) for the kernel (PyTorch keeps (out, in)).
    w1 = jax.random.uniform(k1, (speech_encoder_hidden_size, PROJ_HIDDEN),
                            minval=-bound1, maxval=bound1, dtype=dtype)
    b1 = jax.random.uniform(k2, (PROJ_HIDDEN,),
                            minval=-bound1, maxval=bound1, dtype=dtype)
    w2 = jax.random.uniform(k3, (PROJ_HIDDEN, llm_hidden_size),
                            minval=-bound2, maxval=bound2, dtype=dtype)
    b2 = jax.random.uniform(k4, (llm_hidden_size,),
                            minval=-bound2, maxval=bound2, dtype=dtype)
    return w1, b1, w2, b2


if __name__ == "__main__":
    key = jax.random.PRNGKey(0)
    kx, kp = jax.random.split(key)

    # Small shapes consistent with the module's forward.
    batch, seq = 2, 8
    speech_encoder_hidden_size = 32
    llm_hidden_size = 32

    x = jax.random.normal(kx, (batch, seq, speech_encoder_hidden_size),
                          dtype=jnp.float32)
    w1, b1, w2, b2 = init_projector_params(
        kp, speech_encoder_hidden_size, llm_hidden_size)

    # Cast/pad weights once (outside the hot path), then run the kernel.
    params = prepare_projector_params(w1, b1, w2, b2)
    out = projector_forward(x, params)
    out = jax.block_until_ready(out)

    # Reference in plain JAX (same math as the PyTorch module), full f32.
    ref = jnp.maximum(x @ w1 + b1, 0.0) @ w2 + b2
    assert out.shape == (batch, seq, llm_hidden_size)
    # Kernel uses bf16 operands with f32 accumulation -> loose-ish tolerance.
    assert jnp.allclose(out, ref, atol=2e-2, rtol=2e-2)

    print("KERNEL_OK")
</pallas_src>

<mosaic_0001>
module attributes {stable_mosaic.version = 11 : i64} {
  func.func @_projector_kernel_resident(%arg0: i32, %arg1: memref<8x128xbf16, #tpu.memory_space<vmem>>, %arg2: memref<128x2048xbf16, #tpu.memory_space<vmem>>, %arg3: memref<1x2048xf32, #tpu.memory_space<vmem>>, %arg4: memref<2048x128xbf16, #tpu.memory_space<vmem>>, %arg5: memref<1x128xf32, #tpu.memory_space<vmem>>, %arg6: memref<8x128xf32, #tpu.memory_space<vmem>>, %arg7: memref<8x2048xbf16, #tpu.memory_space<vmem>>) attributes {dimension_semantics = [#tpu.dimension_semantics<parallel>], iteration_bounds = array<i64: 2>, scalar_prefetch = 0 : i64, scratch_operands = 1 : i64, tpu.core_type = #tpu.core_type<tc>, window_params = [{transform_indices = @transform_0, window_bounds = array<i64: 8, 128>}, {pipeline_mode = #tpu.pipeline_mode<synchronous>, transform_indices = @transform_1, window_bounds = array<i64: 128, 2048>}, {pipeline_mode = #tpu.pipeline_mode<synchronous>, transform_indices = @transform_2, window_bounds = array<i64: 1, 2048>}, {pipeline_mode = #tpu.pipeline_mode<synchronous>, transform_indices = @transform_3, window_bounds = array<i64: 2048, 128>}, {pipeline_mode = #tpu.pipeline_mode<synchronous>, transform_indices = @transform_4, window_bounds = array<i64: 1, 128>}, {transform_indices = @transform_5, window_bounds = array<i64: 8, 128>}]} {
    %c0 = arith.constant 0 : index
    %c0_0 = arith.constant 0 : index
    %0 = vector.load %arg1[%c0, %c0_0] : memref<8x128xbf16, #tpu.memory_space<vmem>>, vector<8x128xbf16>
    %c0_1 = arith.constant 0 : index
    %c0_2 = arith.constant 0 : index
    %1 = vector.load %arg2[%c0_1, %c0_2] : memref<128x2048xbf16, #tpu.memory_space<vmem>>, vector<128x2048xbf16>
    %cst = arith.constant dense<0.000000e+00> : vector<8x2048xf32>
    %2 = tpu.matmul %0, %1, %cst {dimension_numbers = #tpu.dot_dimension_numbers<[1], [0], [0], [1], [0, 0, 1, 1], [], []>} : vector<8x128xbf16>, vector<128x2048xbf16>, vector<8x2048xf32> -> vector<8x2048xf32>
    %c0_3 = arith.constant 0 : index
    %c0_4 = arith.constant 0 : index
    %3 = vector.load %arg3[%c0_3, %c0_4] : memref<1x2048xf32, #tpu.memory_space<vmem>>, vector<1x2048xf32>
    %4 = vector.broadcast %3 : vector<1x2048xf32> to vector<8x2048xf32>
    %5 = arith.addf %2, %4 : vector<8x2048xf32>
    %cst_5 = arith.constant 0.000000e+00 : f32
    %6 = vector.broadcast %cst_5 : f32 to vector<8x2048xf32>
    %7 = arith.maximumf %5, %6 : vector<8x2048xf32>
    %8 = arith.truncf %7 : vector<8x2048xf32> to vector<8x2048xbf16>
    %c0_6 = arith.constant 0 : index
    %c0_7 = arith.constant 0 : index
    %9 = vector.load %arg7[%c0_6, %c0_7] : memref<8x2048xbf16, #tpu.memory_space<vmem>>, vector<8x2048xbf16>
    tpu.vector_store %arg7[%c0_6, %c0_7], %8 {strides = array<i32>} : memref<8x2048xbf16, #tpu.memory_space<vmem>>, vector<8x2048xbf16>,
    %c0_8 = arith.constant 0 : index
    %c0_9 = arith.constant 0 : index
    %10 = vector.load %arg7[%c0_8, %c0_9] : memref<8x2048xbf16, #tpu.memory_space<vmem>>, vector<8x2048xbf16>
    %c0_10 = arith.constant 0 : index
    %c0_11 = arith.constant 0 : index
    %11 = vector.load %arg4[%c0_10, %c0_11] : memref<2048x128xbf16, #tpu.memory_space<vmem>>, vector<2048x128xbf16>
    %cst_12 = arith.constant dense<0.000000e+00> : vector<8x128xf32>
    %12 = tpu.matmul %10, %11, %cst_12 {dimension_numbers = #tpu.dot_dimension_numbers<[1], [0], [0], [1], [0, 0, 1, 1], [], []>} : vector<8x2048xbf16>, vector<2048x128xbf16>, vector<8x128xf32> -> vector<8x128xf32>
    %c0_13 = arith.constant 0 : index
    %c0_14 = arith.constant 0 : index
    %13 = vector.load %arg5[%c0_13, %c0_14] : memref<1x128xf32, #tpu.memory_space<vmem>>, vector<1x128xf32>
    %14 = vector.broadcast %13 : vector<1x128xf32> to vector<8x128xf32>
    %15 = arith.addf %12, %14 : vector<8x128xf32>
    %c0_15 = arith.constant 0 : index
    %c0_16 = arith.constant 0 : index
    %16 = vector.load %arg6[%c0_15, %c0_16] : memref<8x128xf32, #tpu.memory_space<vmem>>, vector<8x128xf32>
    tpu.vector_store %arg6[%c0_15, %c0_16], %15 {strides = array<i32>} : memref<8x128xf32, #tpu.memory_space<vmem>>, vector<8x128xf32>,
    return
  }
  func.func @transform_0(%arg0: i32) -> (i32, i32) {
    %c0_i32 = arith.constant 0 : i32
    %c0_i32_0 = arith.constant 0 : i32
    return %arg0, %c0_i32 : i32, i32
  }
  func.func @transform_1(%arg0: i32) -> (i32, i32) {
    %c0_i32 = arith.constant 0 : i32
    %c0_i32_0 = arith.constant 0 : i32
    %c0_i32_1 = arith.constant 0 : i32
    return %c0_i32, %c0_i32_0 : i32, i32
  }
  func.func @transform_2(%arg0: i32) -> (i32, i32) {
    %c0_i32 = arith.constant 0 : i32
    %c0_i32_0 = arith.constant 0 : i32
    %c0_i32_1 = arith.constant 0 : i32
    return %c0_i32, %c0_i32_0 : i32, i32
  }
  func.func @transform_3(%arg0: i32) -> (i32, i32) {
    %c0_i32 = arith.constant 0 : i32
    %c0_i32_0 = arith.constant 0 : i32
    %c0_i32_1 = arith.constant 0 : i32
    return %c0_i32, %c0_i32_0 : i32, i32
  }
  func.func @transform_4(%arg0: i32) -> (i32, i32) {
    %c0_i32 = arith.constant 0 : i32
    %c0_i32_0 = arith.constant 0 : i32
    %c0_i32_1 = arith.constant 0 : i32
    return %c0_i32, %c0_i32_0 : i32, i32
  }
  func.func @transform_5(%arg0: i32) -> (i32, i32) {
    %c0_i32 = arith.constant 0 : i32
    %c0_i32_0 = arith.constant 0 : i32
    return %arg0, %c0_i32 : i32, i32
  }
}

</mosaic_0001>

<bundles_post_ra>
// kernel: tpu_custom_call.1
= control target key start
LH: loop header
LB: loop body
LE: loop exit
PB: predicated region body
PF: predicated region fallthrough
CT: control target
= control target key end

     0   :  { %10 = vsyncpa [#allocation4], 0  ;;  %s4362_s0 = inlined_call_operand.hbm [shape: bf16[16,128], index: 0, kind: input, shape index: {}]   ;;  %s4363_s1 = inlined_call_operand.hbm [shape: bf16[128,2048], index: 1, kind: input, shape index: {}]   ;;  %s4364_s2 = inlined_call_operand.hbm [shape: f32[1,2048], index: 2, kind: input, shape index: {}]   ;;  %s4365_s3 = inlined_call_operand.hbm [shape: bf16[2048,128], index: 3, kind: input, shape index: {}]   ;;  %s4366_s4 = inlined_call_operand.vmem [shape: f32[1,128], index: 4, kind: input, shape index: {}]   ;;  %s4367_s5 = inlined_call_operand.hbm [shape: f32[16,128], index: 5, kind: output, shape index: {}]  }
   0x1   :  { %12 = vsyncpa [#allocation4 + $0x1], 0 }
   0x2   :  { %13 = vsyncpa [#allocation7], 0 }
   0x3   :  { %14 = vsyncpa [#allocation10], 0 }
   0x4   :  { %15 = vsyncpa [#allocation5], 0 }
   0x5   :  { %17 = vsyncpa [#allocation5 + $0x1], 0  ;;  %s4019_s18 = smov 0   ;;  %s4021_s19 = smov 0  }
   0x6   :  { %s4023_s20 = smov 0   ;;  %s4025_s21 = smov 0  }
   0x7 LB: > { %s4040_s22 = sadd.s32 4294967295, %s3978_s21   ;;  %s3081_s23 = sadd.s32 4294967294, %s3978_s21   ;;  %s3978_s21 = sphi %s4025_s21, %s4390_s21   ;;  %s3974_s20 = sphi %s4023_s20, %s4389_s20   ;;  %s3970_s19 = sphi %s4021_s19, %s4388_s19   ;;  %s3966_s18 = sphi %s4019_s18, %s4387_s18  }
   0x8   : > { %p43_p0 = scmp.ne.s32.totalorder %s3970_s19, %s3966_s18  ;;  %p4368_p1 = scmp.eq.s32.totalorder %s4040_s22, 0 }
   0x9   : > { %p157_p3 = scmp.eq.s32.totalorder %s3081_s23, 1  ;;  %p3082_p5 = scmp.ge.s32.totalorder %s3978_s21, 1 }
   0xa   : > { %p4049_p4 = por %p4368_p1, %p43_p0  ;;  %p164_p7 = scmp.lt.s32.totalorder %s3978_s21, 3 }
   0xb   : > { %p4054_p6 = por %p157_p3, %p43_p0  ;;  %s3980_s27 = smov [#allocation6]  }
   0xc   : > { %s4371_s24 = scalar_select %p4049_p4, 1, 0 }
   0xd   : > { %s4372_s25 = scalar_select %p4054_p6, 1, 0 }
   0xe   : > { %p4059_p8 = pnand %p3082_p5, %p164_p7  ;;  %s176_s28 = sshll.u32 %s3980_s27, 4  ;;  %s4063_s28 = int_to_ptr.vmem [resolvable:$true] %s176_s28 }
   0xf   : > { %s3981_s30 = smov [#allocation8]   ;;  %s3982_s7 = smov [#allocation9]  }
  0x10   : > { %s4373_s26 = scalar_select %p4059_p8, 1, 0 }
  0x11   : > { %p3596_p9 = pneg %p4059_p8  ;;  %s190_s6 = sshll.u32 %s3981_s30, 4  ;;  %s4074_s6 = int_to_ptr.vmem [resolvable:$true] %s190_s6 }
  0x12   : > { %s4076_s8 = sshll.u32 %s3982_s7, 4  ;;  %s3790_s11 = scalar_lea.hbm %s4363_s1, 16384  ;;  %s201_s8 = int_to_ptr.vmem [resolvable:$true] %s4076_s8 }
  0x13   : > { %p4070_p11 = pnand %p3596_p9, %p4368_p1  ;;  %p3791_p12 = scmp.ne.s32.totalorder %s4363_s1, %s3790_s11 }
  0x14   : > { %p3797_p5 = scmp.lt.u32.totalorder %s3790_s11, %s4363_s1 }
  0x15   : > { %p4086_p13 = pneg %p4070_p11 }
  0x17   : > { %p3793_p0 = pnand %p4086_p13, %p3791_p12 }
  0x19   : > { %p3794_p3 = pneg %p3793_p0 }
  0x1b   : > { %p3799_p7 = pnand %p3797_p5, %p3794_p3 }
  0x1d   : > { %3802 = shalt.err (!%p3799_p7)
}
  0x1e   : > { %s3803_s17 = scalar_lea.vmem %s4063_s28, 16384  ;;  %p3811_p2 = scmp.lt.s32.totalorder %s4063_s28, %s4063_s28 }
  0x1f   : > { %p3804_p9 = scmp.ne.s32.totalorder %s4063_s28, %s3803_s17  ;;  %p3812_p6 = scmp.lt.s32.totalorder %s3803_s17, %s3803_s17 }
  0x21   : > { %p3806_p10 = pnand %p3804_p9, %p4086_p13  ;;  %p3813_p12 = por %p3812_p6, %p3811_p2 }
  0x23   : > { %p3807_p1 = pneg %p3806_p10 }
  0x25   : > { %p3814_p0 = pnand %p3813_p12, %p3807_p1 }
  0x27   : > { %3817 = shalt.err (!%p3814_p0)
}
  0x28   : > { %s3983_s23 = smov 1024   ;;  %s3984_s27 = smov 64  }
  0x29   : > { %3599 = dma.hbm_to_vmem [thread:$0]  (!%p4070_p11), %s4363_s1, 16384, %s4063_s28, [#allocation7], %s3983_s23, %s3983_s23, %s3984_s27  }
  0x2a   : > { %s3818_s11 = scalar_lea.hbm %s4364_s2, 256 }
  0x2b   : > { %p3819_p1 = scmp.ne.s32.totalorder %s4364_s2, %s3818_s11  ;;  %p3825_p10 = scmp.lt.u32.totalorder %s3818_s11, %s4364_s2 }
  0x2d   : > { %p3821_p2 = pnand %p3819_p1, %p4086_p13 }
  0x2f   : > { %p3822_p6 = pneg %p3821_p2 }
  0x31   : > { %p3827_p3 = pnand %p3825_p10, %p3822_p6 }
  0x33   : > { %3830 = shalt.err (!%p3827_p3)
}
  0x34   : > { %s3831_s28 = scalar_lea.vmem %s4074_s6, 256  ;;  %p3839_p12 = scmp.lt.s32.totalorder %s4074_s6, %s4074_s6 }
  0x35   : > { %p3832_p5 = scmp.ne.s32.totalorder %s4074_s6, %s3831_s28  ;;  %p3840_p0 = scmp.lt.s32.totalorder %s3831_s28, %s3831_s28 }
  0x37   : > { %p3834_p7 = pnand %p3832_p5, %p4086_p13  ;;  %p3841_p1 = por %p3840_p0, %p3839_p12 }
  0x39   : > { %p3835_p9 = pneg %p3834_p7 }
  0x3b   : > { %p3842_p2 = pnand %p3841_p1, %p3835_p9 }
  0x3d   : > { %3845 = shalt.err (!%p3842_p2)
}
  0x3e   : > { %3602 = dma.hbm_to_vmem [thread:$0]  (!%p4070_p11), %s4364_s2, 256, %s4074_s6, [#allocation7]  }
  0x3f   : > { %s3846_s9 = scalar_lea.hbm %s4365_s3, 16384 }
  0x40   : > { %p3847_p6 = scmp.ne.s32.totalorder %s4365_s3, %s3846_s9  ;;  %p3853_p5 = scmp.lt.u32.totalorder %s3846_s9, %s4365_s3 }
  0x42   : > { %p3849_p10 = pnand %p3847_p6, %p4086_p13 }
  0x44   : > { %p3850_p3 = pneg %p3849_p10 }
  0x46   : > { %p3855_p7 = pnand %p3853_p5, %p3850_p3 }
  0x48   : > { %3858 = shalt.err (!%p3855_p7)
}
  0x49   : > { %s3859_s15 = scalar_lea.vmem %s201_s8, 16384  ;;  %p3867_p1 = scmp.lt.s32.totalorder %s201_s8, %s201_s8 }
  0x4a   : > { %p3860_p9 = scmp.ne.s32.totalorder %s201_s8, %s3859_s15  ;;  %p3868_p2 = scmp.lt.s32.totalorder %s3859_s15, %s3859_s15 }
  0x4c   : > { %p3862_p12 = pnand %p3860_p9, %p4086_p13  ;;  %p3869_p4 = por %p3868_p2, %p3867_p1 }
  0x4e   : > { %p3863_p0 = pneg %p3862_p12 }
  0x50   : > { %p3870_p8 = pnand %p3869_p4, %p3863_p0 }
  0x52   : > { %3873 = shalt.err (!%p3870_p8)
}
  0x53   : > { %s3985_s6 = smov 4   ;;  %s4153_s14 = sadd.s32 1, %s3978_s21  }
  0x54   : > { %3605 = dma.hbm_to_vmem [thread:$0]  (!%p4070_p11), %s4365_s3, 16384, %s201_s8, [#allocation10], %s3984_s27, %s3984_s27, %s3985_s6  }
  0x55   : > { %s27_s29 = ssub.s32 %s3978_s21, %s4153_s14  ;;  %s30_s17 = sadd.s32 1, %s3974_s20 }
  0x56   : > { %p28_p4 = scmp.eq.s32.totalorder %s27_s29, 0  ;;  %p37_p8 = scmp.ne.s32.totalorder %s3974_s20, %s3970_s19 }
  0x57   : > { %p38_p13 = scmp.eq.s32.totalorder %s3978_s21, 0  ;;  %p4376_p10 = scmp.eq.s32.totalorder %s4040_s22, 1 }
  0x58   : > { %s4162_s23 = scalar_select %p28_p4, %s3974_s20, %s30_s17  }
  0x59   : > { %p39_p6 = por %p38_p13, %p37_p8  ;;  %p4166_p3 = por %p4376_p10, %p37_p8 }
  0x5a   : > { %p3617_p5 = scmp.lt.s32.totalorder %s3978_s21, 2  ;;  %s217_s7 = sand.u32 1, %s3974_s20  }
  0x5b   : > { %s3087_s9 = sshll.u32 %s217_s7, 2  ;;  %s3088_s8 = sshll.u32 %s3978_s21, 6 }
  0x5c   : > { %s4176_s11 = scalar_lea.hbm %s4362_s0, %s3088_s8  ;;  %s221_s12 = scalar_lea.vmem [#allocation3], %s3087_s9 }
  0x5d   : > { %s228_s13 = sshll.u32 %s221_s12, 4  ;;  %p4180_p11 = pnand %p3617_p5, %p39_p6  ;;  %s4178_s13 = int_to_ptr.vmem [resolvable:$true] %s228_s13 }
  0x5e   : > { %s218_s6 = scalar_lea.sflag [#allocation4], %s217_s7  ;;  %s3874_s16 = scalar_lea.hbm %s4176_s11, 64 }
  0x5f   : > { %p3875_p7 = scmp.ne.s32.totalorder %s4176_s11, %s3874_s16  ;;  %p3876_p9 = pneg %p4180_p11 }
  0x60   : > { %s3879_s17 = scalar_lea.hbm %s4362_s0, 128  ;;  %p3880_p1 = scmp.lt.u32.totalorder %s4176_s11, %s4362_s0 }
  0x61   : > { %p3877_p12 = pnand %p3876_p9, %p3875_p7  ;;  %p3881_p2 = scmp.lt.u32.totalorder %s3879_s17, %s3874_s16 }
  0x62   : > { %p3883_p8 = scmp.lt.u32.totalorder %s3874_s16, %s4176_s11 }
  0x63   : > { %p3878_p0 = pneg %p3877_p12  ;;  %p3882_p4 = por %p3881_p2, %p3880_p1 }
  0x65   : > { %p3884_p13 = por %p3883_p8, %p3882_p4 }
  0x67   : > { %p3885_p6 = pnand %p3884_p13, %p3878_p0 }
  0x69   : > { %3888 = shalt.err (!%p3885_p6)
}
  0x6a   : > { %s3889_s7 = scalar_lea.vmem %s4178_s13, 64  ;;  %s3986_s27 = smov [#allocation3]  }
  0x6b   : > { %p3890_p10 = scmp.ne.s32.totalorder %s4178_s13, %s3889_s7  ;;  %s3894_s10 = sshll.u32 %s3986_s27, 4  ;;  %s3895_s10 = int_to_ptr.vmem [resolvable:$false] %s3894_s10 }
  0x6c   : > { %s3896_s12 = scalar_lea.vmem %s3895_s10, 128  ;;  %p3897_p12 = scmp.lt.s32.totalorder %s4178_s13, %s3895_s10 }
  0x6d   : > { %p3892_p5 = pnand %p3890_p10, %p3876_p9  ;;  %p3898_p1 = scmp.lt.s32.totalorder %s3896_s12, %s3889_s7 }
  0x6f   : > { %p3893_p7 = pneg %p3892_p5  ;;  %p3899_p2 = por %p3898_p1, %p3897_p12 }
  0x71   : > { %p3900_p4 = pnand %p3899_p2, %p3893_p7 }
  0x73   : > { %3903 = shalt.err (!%p3900_p4)
}
  0x74   : > { %3609 = dma.hbm_to_vmem [thread:$0]  (!%p4180_p11), %s4176_s11, 64, %s4178_s13, %s218_s6  }
  0x75   : > { %p4379_p0 = scmp.ne.s32.totalorder %s4373_s26, 0 }
  0x76   : > { %s4212_s16 = sand.u32 (!%p4379_p0), 1, %s3970_s19   ;;  %p4380_p9 = scmp.ne.s32.totalorder (!%p4379_p0), %s4371_s24, 0 }
  0x77   : > { %237 = sbr.rel (%p4379_p0) target bundleno = 719 (0x2cf), region = 40  ;;  %s3090_s28 = sshll.u32 (!%p4379_p0), %s4212_s16, 2 }
  0x78   : > { %s240_s29 = scalar_lea.sflag (!%p4379_p0), [#allocation4], %s4212_s16  ;;  %s4216_s17 = scalar_lea.vmem (!%p4379_p0), [#allocation3], %s3090_s28 }
  0x7e   : > { %3949 = dma.done.wait (%p4380_p9), %s240_s29, 64  }
  0x7f   : > { %3951 = vsyncadd (%p4380_p9), %s240_s29, 4294967232  ;;  %p4381_p11 = scmp.eq.s32.totalorder %s4040_s22, 0 }
  0x81   : > { %3953 = dma.done.wait (%p4381_p11), [#allocation7], 16640   ;;  %p4382_p8 = pmov %p4381_p11 }
  0x83   : > { %3955 = vsyncadd (%p4382_p8), [#allocation7], 4294950656  ;;  %p4383_p13 = pmov %p4382_p8 }
  0x84   : > { %p4384_p6 = pmov %p4382_p8 }
  0x85   : > { %3957 = dma.done.wait (%p4383_p13), [#allocation10], 16384  }
  0x86   : > { %3959 = vsyncadd (%p4384_p6), [#allocation10], 4294950912  ;;  %v3987_v0 = vmov 0   ;;  %v284_v1 = vld [vmem:[#allocation6] sm:$0xff]  ;;  %v285_v3 = vld [vmem:[#allocation6 + $0x8] sm:$0xff]  ;;  %s3094_s11 = sshll.u32 %s4212_s16, 3 }
  0x87   : > { %1168 = vmatprep.mubr.bf16.mxu0 %v3987_v0  ;;  %1209 = vmatprep.mubr.bf16.mxu1 %v3987_v0  ;;  %v292_v2 = vld [vmem:[#allocation6 + $0x40] sm:$0xff]  ;;  %v293_v5 = vld [vmem:[#allocation6 + $0x48] sm:$0xff]  ;;  %v286_v63 = vld [vmem:[#allocation6 + $0x10] sm:$0xff]  ;;  %s3377_s13 = sshll.u32 %s4040_s22, 7  ;;  %s281_s15 = scalar_lea.vmem [#allocation11], %s3094_s11 }
  0x88   : > { %v3096_v4 = vcombine.high %v284_v1, %v292_v2  ;;  %v3095_v6 = vcombine.low %v284_v1, %v292_v2  ;;  %v300_v7 = vld [vmem:[#allocation6 + $0x80] sm:$0xff]  ;;  %v3098_v9 = vcombine.high %v285_v3, %v293_v5  ;;  %v3097_v10 = vcombine.low %v285_v3, %v293_v5  ;;  %v301_v12 = vld [vmem:[#allocation6 + $0x88] sm:$0xff]  ;;  %v294_v1 = vld [vmem:[#allocation6 + $0x50] sm:$0xff]  ;;  %s2982_s6 = sshll.u32 %s281_s15, 4  ;;  %s4318_s7 = scalar_lea.hbm %s4367_s5, %s3377_s13  ;;  %s4320_s6 = int_to_ptr.vmem [resolvable:$true] %s2982_s6 }
  0x89   : > { %v308_v8 = vld [vmem:[#allocation6 + $0xc0] sm:$0xff]  ;;  %v309_v13 = vld [vmem:[#allocation6 + $0xc8] sm:$0xff]  ;;  %v287_v2 = vld [vmem:[#allocation6 + $0x18] sm:$0xff]  ;;  %s2969_s27 = scalar_lea.sflag [#allocation5], %s4212_s16  ;;  %s3904_s10 = scalar_lea.vmem %s4320_s6, 128 }
  0x8a   : > { %v3112_v11 = vcombine.high %v300_v7, %v308_v8  ;;  %v316_v14 = vld [vmem:[#allocation6 + $0x100] sm:$0xff]  ;;  %1136 = vmatprep.subr.bf16.mxu0 %v3096_v4  ;;  %v3114_v15 = vcombine.high %v301_v12, %v309_v13  ;;  %v317_v17 = vld [vmem:[#allocation6 + $0x108] sm:$0xff]  ;;  %1177 = vmatprep.subr.bf16.mxu1 %v3098_v9  ;;  %v3111_v19 = vcombine.low %v300_v7, %v308_v8  ;;  %v295_v3 = vld [vmem:[#allocation6 + $0x58] sm:$0xff]  ;;  %p3905_p10 = scmp.ne.s32.totalorder %s4320_s6, %s3904_s10  ;;  %s3988_s22 = smov [#allocation11]  }
  0x8b   : > { %v324_v16 = vld [vmem:[#allocation6 + $0x140] sm:$0xff]  ;;  %v325_v18 = vld [vmem:[#allocation6 + $0x148] sm:$0xff]  ;;  %1137 = vmatpush1.bf16.msra.mxu0 %v3095_v6  ;;  %1178 = vmatpush1.bf16.msra.mxu1 %v3097_v10  ;;  %v3113_v20 = vcombine.low %v301_v12, %v309_v13  ;;  %v3100_v6 = vcombine.high %v286_v63, %v294_v1  ;;  %v3102_v7 = vcombine.high %v287_v2, %v295_v3  ;;  %v302_v8 = vld [vmem:[#allocation6 + $0x90] sm:$0xff]  ;;  %s3908_s12 = sshll.u32 %s3988_s22, 4  ;;  %s3909_s12 = int_to_ptr.vmem [resolvable:$false] %s3908_s12 }
  0x8c   : > { %1138 = vmatprep.subr.bf16.mxu0 %v3112_v11  ;;  %v3128_v21 = vcombine.high %v316_v14, %v324_v16  ;;  %1179 = vmatprep.subr.bf16.mxu1 %v3114_v15  ;;  %v3130_v22 = vcombine.high %v317_v17, %v325_v18  ;;  %v332_v23 = vld [vmem:[#allocation6 + $0x180] sm:$0xff]  ;;  %v333_v25 = vld [vmem:[#allocation6 + $0x188] sm:$0xff]  ;;  %v3127_v27 = vcombine.low %v316_v14, %v324_v16  ;;  %v310_v9 = vld [vmem:[#allocation6 + $0xd0] sm:$0xff]  ;;  %p3906_p5 = pnand %p3905_p10, %p4166_p3  ;;  %s3910_s28 = scalar_lea.vmem %s3909_s12, 256 }
  0x8d   : > { %v340_v24 = vld [vmem:[#allocation6 + $0x1c0] sm:$0xff]  ;;  %v341_v26 = vld [vmem:[#allocation6 + $0x1c8] sm:$0xff]  ;;  %v3129_v28 = vcombine.low %v317_v17, %v325_v18  ;;  %v303_v10 = vld [vmem:[#allocation6 + $0x98] sm:$0xff]  ;;  %v3099_v13 = vcombine.low %v286_v63, %v294_v1  ;;  %v3101_v14 = vcombine.low %v287_v2, %v295_v3  ;;  %v3116_v15 = vcombine.high %v302_v8, %v310_v9  ;;  %p3911_p12 = scmp.lt.s32.totalorder %s4320_s6, %s3909_s12  ;;  %p3912_p1 = scmp.lt.s32.totalorder %s3910_s28, %s3904_s10 }
  0x8e   : > { %v3144_v29 = vcombine.high %v332_v23, %v340_v24  ;;  %v3146_v30 = vcombine.high %v333_v25, %v341_v26  ;;  %v348_v31 = vld [vmem:[#allocation6 + $0x200] sm:$0xff]  ;;  %v349_v33 = vld [vmem:[#allocation6 + $0x208] sm:$0xff]  ;;  %v3143_v35 = vcombine.low %v332_v23, %v340_v24  ;;  %v3145_v36 = vcombine.low %v333_v25, %v341_v26  ;;  %v311_v11 = vld [vmem:[#allocation6 + $0xd8] sm:$0xff]  ;;  %p3907_p7 = pneg %p3906_p5 }
  0x8f   : > { %1139 = vmatpush1.bf16.msra.mxu0 %v3111_v19  ;;  %1180 = vmatpush1.bf16.msra.mxu1 %v3113_v20  ;;  %v356_v32 = vld [vmem:[#allocation6 + $0x240] sm:$0xff]  ;;  %v357_v34 = vld [vmem:[#allocation6 + $0x248] sm:$0xff]  ;;  %v4233_v12 = vld [vmem:[%s4216_s17] sm:$0xf]  ;;  %v3118_v16 = vcombine.high %v303_v10, %v311_v11  ;;  %p3913_p2 = por %p3912_p1, %p3911_p12 }
  0x90   : > { %1140 = vmatprep.subr.bf16.mxu0 %v3128_v21  ;;  %1181 = vmatprep.subr.bf16.mxu1 %v3130_v22  ;;  %v3160_v37 = vcombine.high %v348_v31, %v356_v32  ;;  %v3162_v38 = vcombine.high %v349_v33, %v357_v34  ;;  %v364_v39 = vld [vmem:[#allocation6 + $0x280] sm:$0xff]  ;;  %v365_v41 = vld [vmem:[#allocation6 + $0x288] sm:$0xff]  ;;  %v3159_v43 = vcombine.low %v348_v31, %v356_v32  ;;  %v318_v17 = vld [vmem:[#allocation6 + $0x110] sm:$0xff] }
  0x91   : > { %v372_v40 = vld [vmem:[#allocation6 + $0x2c0] sm:$0xff]  ;;  %v373_v42 = vld [vmem:[#allocation6 + $0x2c8] sm:$0xff]  ;;  %v3161_v44 = vcombine.low %v349_v33, %v357_v34  ;;  %v326_v18 = vld [vmem:[#allocation6 + $0x150] sm:$0xff]  ;;  %v3115_v21 = vcombine.low %v302_v8, %v310_v9  ;;  %v3117_v22 = vcombine.low %v303_v10, %v311_v11  ;;  %p3914_p4 = pnand %p3913_p2, %p3907_p7 }
  0x92   : > { %v3176_v45 = vcombine.high %v364_v39, %v372_v40  ;;  %v3178_v46 = vcombine.high %v365_v41, %v373_v42  ;;  %v380_v47 = vld [vmem:[#allocation6 + $0x300] sm:$0xff]  ;;  %v381_v49 = vld [vmem:[#allocation6 + $0x308] sm:$0xff]  ;;  %v3175_v51 = vcombine.low %v364_v39, %v372_v40  ;;  %v3177_v52 = vcombine.low %v365_v41, %v373_v42  ;;  %v319_v19 = vld [vmem:[#allocation6 + $0x118] sm:$0xff] }
  0x93   : > { %1141 = vmatpush1.bf16.msra.mxu0 %v3127_v27  ;;  %1182 = vmatpush1.bf16.msra.mxu1 %v3129_v28  ;;  %v388_v48 = vld [vmem:[#allocation6 + $0x340] sm:$0xff]  ;;  %v389_v50 = vld [vmem:[#allocation6 + $0x348] sm:$0xff]  ;;  %v327_v20 = vld [vmem:[#allocation6 + $0x158] sm:$0xff]  ;;  %v3132_v23 = vcombine.high %v318_v17, %v326_v18 }
  0x94   : > { %1142 = vmatprep.subr.bf16.mxu0 %v3144_v29  ;;  %1183 = vmatprep.subr.bf16.mxu1 %v3146_v30  ;;  %v3192_v53 = vcombine.high %v380_v47, %v388_v48  ;;  %v3194_v54 = vcombine.high %v381_v49, %v389_v50  ;;  %v396_v55 = vld [vmem:[#allocation6 + $0x380] sm:$0xff]  ;;  %v397_v57 = vld [vmem:[#allocation6 + $0x388] sm:$0xff]  ;;  %v3191_v59 = vcombine.low %v380_v47, %v388_v48  ;;  %v334_v25 = vld [vmem:[#allocation6 + $0x190] sm:$0xff] }
  0x95   : > { %v404_v56 = vld [vmem:[#allocation6 + $0x3c0] sm:$0xff]  ;;  %v405_v58 = vld [vmem:[#allocation6 + $0x3c8] sm:$0xff]  ;;  %v3193_v60 = vcombine.low %v381_v49, %v389_v50  ;;  %v3134_v24 = vcombine.high %v319_v19, %v327_v20  ;;  %v342_v26 = vld [vmem:[#allocation6 + $0x1d0] sm:$0xff]  ;;  %v3131_v29 = vcombine.low %v318_v17, %v326_v18  ;;  %v3133_v30 = vcombine.low %v319_v19, %v327_v20 }
  0x96   : > { %v3208_v61 = vcombine.high %v396_v55, %v404_v56  ;;  %v3210_v62 = vcombine.high %v397_v57, %v405_v58  ;;  %v3207_v4 = vcombine.low %v396_v55, %v404_v56  ;;  %v3209_v5 = vcombine.low %v397_v57, %v405_v58  ;;  %v335_v27 = vld [vmem:[#allocation6 + $0x198] sm:$0xff]  ;;  %v350_v33 = vld [vmem:[#allocation6 + $0x210] sm:$0xff]  ;;  %v296_v2 = vld [vmem:[#allocation6 + $0x60] sm:$0xff] }
  0x97   : > { %1143 = vmatpush1.bf16.msra.mxu0 %v3143_v35  ;;  %1184 = vmatpush1.bf16.msra.mxu1 %v3145_v36  ;;  %v343_v28 = vld [vmem:[#allocation6 + $0x1d8] sm:$0xff]  ;;  %v3148_v31 = vcombine.high %v334_v25, %v342_v26  ;;  %v358_v34 = vld [vmem:[#allocation6 + $0x250] sm:$0xff]  ;;  %v312_v10 = vld [vmem:[#allocation6 + $0xe0] sm:$0xff] }
  0x98   : > { %1144 = vmatprep.subr.bf16.mxu0 %v3160_v37  ;;  %1185 = vmatprep.subr.bf16.mxu1 %v3162_v38  ;;  %v3150_v32 = vcombine.high %v335_v27, %v343_v28  ;;  %v351_v35 = vld [vmem:[#allocation6 + $0x218] sm:$0xff]  ;;  %v3147_v37 = vcombine.low %v334_v25, %v342_v26  ;;  %v366_v38 = vld [vmem:[#allocation6 + $0x290] sm:$0xff]  ;;  %v3149_v39 = vcombine.low %v335_v27, %v343_v28  ;;  %v328_v19 = vld [vmem:[#allocation6 + $0x160] sm:$0xff] }
  0x99   : > { %v359_v36 = vld [vmem:[#allocation6 + $0x258] sm:$0xff]  ;;  %v3164_v40 = vcombine.high %v350_v33, %v358_v34  ;;  %v374_v41 = vld [vmem:[#allocation6 + $0x2d0] sm:$0xff]  ;;  %v344_v25 = vld [vmem:[#allocation6 + $0x1e0] sm:$0xff] }
  0x9a   : > { %v3166_v42 = vcombine.high %v351_v35, %v359_v36  ;;  %v3165_v47 = vcombine.low %v351_v35, %v359_v36  ;;  %v3180_v48 = vcombine.high %v366_v38, %v374_v41  ;;  %v390_v49 = vld [vmem:[#allocation6 + $0x350] sm:$0xff]  ;;  %v337_v28 = vld [vmem:[#allocation6 + $0x1a8] sm:$0xff] }
  0x9b   : > { %1145 = vmatpush1.bf16.msra.mxu0 %v3159_v43  ;;  %1186 = vmatpush1.bf16.msra.mxu1 %v3161_v44  ;;  %v367_v43 = vld [vmem:[#allocation6 + $0x298] sm:$0xff]  ;;  %v406_v57 = vld [vmem:[#allocation6 + $0x3d0] sm:$0xff]  ;;  %v353_v36 = vld [vmem:[#allocation6 + $0x228] sm:$0xff] }
  0x9c   : > { %1146 = vmatprep.subr.bf16.mxu0 %v3176_v45  ;;  %1187 = vmatprep.subr.bf16.mxu1 %v3178_v46  ;;  %v375_v44 = vld [vmem:[#allocation6 + $0x2d8] sm:$0xff]  ;;  %v3163_v45 = vcombine.low %v350_v33, %v358_v34  ;;  %v382_v46 = vld [vmem:[#allocation6 + $0x310] sm:$0xff]  ;;  %v360_v33 = vld [vmem:[#allocation6 + $0x260] sm:$0xff] }
  0x9d   : > { %v3182_v50 = vcombine.high %v367_v43, %v375_v44  ;;  %v3181_v55 = vcombine.low %v367_v43, %v375_v44  ;;  %v3196_v56 = vcombine.high %v382_v46, %v390_v49  ;;  %v369_v44 = vld [vmem:[#allocation6 + $0x2a8] sm:$0xff] }
  0x9f   : > { %1147 = vmatpush1.bf16.msra.mxu0 %v3175_v51  ;;  %1188 = vmatpush1.bf16.msra.mxu1 %v3177_v52  ;;  %v383_v51 = vld [vmem:[#allocation6 + $0x318] sm:$0xff] }
  0xa0   : > { %1148 = vmatprep.subr.bf16.mxu0 %v3192_v53  ;;  %1189 = vmatprep.subr.bf16.mxu1 %v3194_v54  ;;  %v391_v52 = vld [vmem:[#allocation6 + $0x358] sm:$0xff]  ;;  %v3179_v53 = vcombine.low %v366_v38, %v374_v41  ;;  %v398_v54 = vld [vmem:[#allocation6 + $0x390] sm:$0xff]  ;;  %v376_v41 = vld [vmem:[#allocation6 + $0x2e0] sm:$0xff] }
  0xa1   : > { %v3198_v58 = vcombine.high %v383_v51, %v391_v52  ;;  %v3197_v63 = vcombine.low %v383_v51, %v391_v52  ;;  %v3212_v1 = vcombine.high %v398_v54, %v406_v57  ;;  %v385_v52 = vld [vmem:[#allocation6 + $0x328] sm:$0xff] }
  0xa3   : > { %1149 = vmatpush1.bf16.msra.mxu0 %v3191_v59  ;;  %1190 = vmatpush1.bf16.msra.mxu1 %v3193_v60  ;;  %v399_v59 = vld [vmem:[#allocation6 + $0x398] sm:$0xff] }
  0xa4   : > { %1150 = vmatprep.subr.bf16.mxu0 %v3208_v61  ;;  %1191 = vmatprep.subr.bf16.mxu1 %v3210_v62  ;;  %v407_v60 = vld [vmem:[#allocation6 + $0x3d8] sm:$0xff]  ;;  %v3195_v61 = vcombine.low %v382_v46, %v390_v49  ;;  %v288_v62 = vld [vmem:[#allocation6 + $0x20] sm:$0xff] }
  0xa5   : > { %v3214_v3 = vcombine.high %v399_v59, %v407_v60  ;;  %v3213_v8 = vcombine.low %v399_v59, %v407_v60  ;;  %v3104_v9 = vcombine.high %v288_v62, %v296_v2  ;;  %v392_v49 = vld [vmem:[#allocation6 + $0x360] sm:$0xff]  ;;  %v401_v60 = vld [vmem:[#allocation6 + $0x3a8] sm:$0xff] }
  0xa7   : > { %1151 = vmatpush1.bf16.msra.mxu0 %v3207_v4  ;;  %1192 = vmatpush1.bf16.msra.mxu1 %v3209_v5  ;;  %v289_v4 = vld [vmem:[#allocation6 + $0x28] sm:$0xff] }
  0xa8   : > { %1218 = vmatprep.subr.bf16.mxu0 %v3100_v6  ;;  %1259 = vmatprep.subr.bf16.mxu1 %v3102_v7  ;;  %v297_v5 = vld [vmem:[#allocation6 + $0x68] sm:$0xff]  ;;  %v3211_v6 = vcombine.low %v398_v54, %v406_v57  ;;  %v304_v7 = vld [vmem:[#allocation6 + $0xa0] sm:$0xff] }
  0xa9   : > { %v3106_v11 = vcombine.high %v289_v4, %v297_v5  ;;  %v3105_v17 = vcombine.low %v289_v4, %v297_v5  ;;  %v3120_v18 = vcombine.high %v304_v7, %v312_v10  ;;  %v408_v57 = vld [vmem:[#allocation6 + $0x3e0] sm:$0xff]  ;;  %v291_v5 = vld [vmem:[#allocation6 + $0x38] sm:$0xff] }
  0xaa   : > { %1169 = vmatmul.mubr.bf16.vlgmr.msra.gmra.mrb[0].mxu0 %v4233_v12  ;;  %1210 = vmatmul.mubr.bf16.vlgmr.msra.gmra.mrb[0].mxu1 %v4233_v12 }
  0xab   : > { %1219 = vmatpush1.bf16.msra.mxu0 %v3099_v13  ;;  %1260 = vmatpush1.bf16.msra.mxu1 %v3101_v14  ;;  %v305_v13 = vld [vmem:[#allocation6 + $0xa8] sm:$0xff] }
  0xac   : > { %1220 = vmatprep.subr.bf16.mxu0 %v3116_v15  ;;  %1261 = vmatprep.subr.bf16.mxu1 %v3118_v16  ;;  %v313_v14 = vld [vmem:[#allocation6 + $0xe8] sm:$0xff]  ;;  %v3103_v15 = vcombine.low %v288_v62, %v296_v2  ;;  %v320_v16 = vld [vmem:[#allocation6 + $0x120] sm:$0xff]  ;;  %v298_v2 = vld [vmem:[#allocation6 + $0x70] sm:$0xff] }
  0xad   : > { %1250 = vmatprep.mubr.bf16.mxu0 %v3987_v0  ;;  %1291 = vmatprep.mubr.bf16.mxu1 %v3987_v0  ;;  %v3122_v20 = vcombine.high %v305_v13, %v313_v14  ;;  %v3121_v26 = vcombine.low %v305_v13, %v313_v14  ;;  %v3136_v27 = vcombine.high %v320_v16, %v328_v19  ;;  %v307_v14 = vld [vmem:[#allocation6 + $0xb8] sm:$0xff] }
  0xaf   : > { %1221 = vmatpush1.bf16.msra.mxu0 %v3115_v21  ;;  %1262 = vmatpush1.bf16.msra.mxu1 %v3117_v22  ;;  %v321_v21 = vld [vmem:[#allocation6 + $0x128] sm:$0xff] }
  0xb0   : > { %1222 = vmatprep.subr.bf16.mxu0 %v3132_v23  ;;  %1263 = vmatprep.subr.bf16.mxu1 %v3134_v24  ;;  %v329_v22 = vld [vmem:[#allocation6 + $0x168] sm:$0xff]  ;;  %v3119_v23 = vcombine.low %v304_v7, %v312_v10  ;;  %v336_v24 = vld [vmem:[#allocation6 + $0x1a0] sm:$0xff]  ;;  %v314_v10 = vld [vmem:[#allocation6 + $0xf0] sm:$0xff] }
  0xb1   : > { %v3137_v34 = vcombine.low %v321_v21, %v329_v22  ;;  %v3152_v35 = vcombine.high %v336_v24, %v344_v25 }
  0xb3   : > { %1223 = vmatpush1.bf16.msra.mxu0 %v3131_v29  ;;  %1264 = vmatpush1.bf16.msra.mxu1 %v3133_v30  ;;  %v345_v29 = vld [vmem:[#allocation6 + $0x1e8] sm:$0xff]  ;;  %v3138_v30 = vcombine.high %v321_v21, %v329_v22  ;;  %v323_v22 = vld [vmem:[#allocation6 + $0x138] sm:$0xff] }
  0xb4   : > { %1224 = vmatprep.subr.bf16.mxu0 %v3148_v31  ;;  %1265 = vmatprep.subr.bf16.mxu1 %v3150_v32  ;;  %v3135_v31 = vcombine.low %v320_v16, %v328_v19  ;;  %v352_v32 = vld [vmem:[#allocation6 + $0x220] sm:$0xff]  ;;  %v3154_v38 = vcombine.high %v337_v28, %v345_v29  ;;  %v330_v19 = vld [vmem:[#allocation6 + $0x170] sm:$0xff] }
  0xb5   : > { %v3168_v43 = vcombine.high %v352_v32, %v360_v33 }
  0xb7   : > { %1225 = vmatpush1.bf16.msra.mxu0 %v3147_v37  ;;  %1266 = vmatpush1.bf16.msra.mxu1 %v3149_v39  ;;  %v361_v37 = vld [vmem:[#allocation6 + $0x268] sm:$0xff]  ;;  %v3151_v39 = vcombine.low %v336_v24, %v344_v25 }
  0xb8   : > { %1226 = vmatprep.subr.bf16.mxu0 %v3164_v40  ;;  %1267 = vmatprep.subr.bf16.mxu1 %v3166_v42  ;;  %v368_v40 = vld [vmem:[#allocation6 + $0x2a0] sm:$0xff]  ;;  %v3153_v42 = vcombine.low %v337_v28, %v345_v29  ;;  %v3170_v46 = vcombine.high %v353_v36, %v361_v37 }
  0xb9   : > { %v3184_v51 = vcombine.high %v368_v40, %v376_v41 }
  0xbb   : > { %1227 = vmatpush1.bf16.msra.mxu0 %v3163_v45  ;;  %1268 = vmatpush1.bf16.msra.mxu1 %v3165_v47  ;;  %v377_v45 = vld [vmem:[#allocation6 + $0x2e8] sm:$0xff]  ;;  %v3167_v47 = vcombine.low %v352_v32, %v360_v33 }
  0xbc   : > { %1228 = vmatprep.subr.bf16.mxu0 %v3180_v48  ;;  %1269 = vmatprep.subr.bf16.mxu1 %v3182_v50  ;;  %v384_v48 = vld [vmem:[#allocation6 + $0x320] sm:$0xff]  ;;  %v3169_v50 = vcombine.low %v353_v36, %v361_v37  ;;  %v3186_v54 = vcombine.high %v369_v44, %v377_v45  ;;  %v355_v37 = vld [vmem:[#allocation6 + $0x238] sm:$0xff] }
  0xbd   : > { %v3200_v59 = vcombine.high %v384_v48, %v392_v49 }
  0xbf   : > { %1229 = vmatpush1.bf16.msra.mxu0 %v3179_v53  ;;  %1270 = vmatpush1.bf16.msra.mxu1 %v3181_v55  ;;  %v393_v53 = vld [vmem:[#allocation6 + $0x368] sm:$0xff]  ;;  %v3183_v55 = vcombine.low %v368_v40, %v376_v41  ;;  %v370_v41 = vld [vmem:[#allocation6 + $0x2b0] sm:$0xff] }
  0xc0   : > { %1230 = vmatprep.subr.bf16.mxu0 %v3196_v56  ;;  %1271 = vmatprep.subr.bf16.mxu1 %v3198_v58  ;;  %v400_v56 = vld [vmem:[#allocation6 + $0x3a0] sm:$0xff]  ;;  %v3185_v58 = vcombine.low %v369_v44, %v377_v45  ;;  %v3202_v62 = vcombine.high %v385_v52, %v393_v53  ;;  %v371_v44 = vld [vmem:[#allocation6 + $0x2b8] sm:$0xff] }
  0xc1   : > { %v3216_v4 = vcombine.high %v400_v56, %v408_v57  ;;  %v379_v45 = vld [vmem:[#allocation6 + $0x2f8] sm:$0xff] }
  0xc3   : > { %1231 = vmatpush1.bf16.msra.mxu0 %v3195_v61  ;;  %1272 = vmatpush1.bf16.msra.mxu1 %v3197_v63  ;;  %v409_v61 = vld [vmem:[#allocation6 + $0x3e8] sm:$0xff]  ;;  %v3199_v63 = vcombine.low %v384_v48, %v392_v49  ;;  %v386_v48 = vld [vmem:[#allocation6 + $0x330] sm:$0xff] }
  0xc4   : > { %1232 = vmatprep.subr.bf16.mxu0 %v3212_v1  ;;  %1273 = vmatprep.subr.bf16.mxu1 %v3214_v3  ;;  %v290_v1 = vld [vmem:[#allocation6 + $0x30] sm:$0xff]  ;;  %v3201_v3 = vcombine.low %v385_v52, %v393_v53  ;;  %v3218_v7 = vcombine.high %v401_v60, %v409_v61  ;;  %v387_v52 = vld [vmem:[#allocation6 + $0x338] sm:$0xff] }
  0xc5   : > { %v3108_v13 = vcombine.high %v290_v1, %v298_v2  ;;  %v394_v49 = vld [vmem:[#allocation6 + $0x370] sm:$0xff]  ;;  %v395_v53 = vld [vmem:[#allocation6 + $0x378] sm:$0xff] }
  0xc7   : > { %1233 = vmatpush1.bf16.msra.mxu0 %v3211_v6  ;;  %1274 = vmatpush1.bf16.msra.mxu1 %v3213_v8  ;;  %v299_v6 = vld [vmem:[#allocation6 + $0x78] sm:$0xff]  ;;  %v3215_v8 = vcombine.low %v400_v56, %v408_v57  ;;  %v3189_v56 = vcombine.low %v371_v44, %v379_v45  ;;  %v3204_v57 = vcombine.high %v386_v48, %v394_v49 }
  0xc8   : > { %1300 = vmatprep.subr.bf16.mxu0 %v3104_v9  ;;  %1341 = vmatprep.subr.bf16.mxu1 %v3106_v11  ;;  %v306_v9 = vld [vmem:[#allocation6 + $0xb0] sm:$0xff]  ;;  %v3217_v11 = vcombine.low %v401_v60, %v409_v61  ;;  %v3110_v16 = vcombine.high %v291_v5, %v299_v6  ;;  %v403_v61 = vld [vmem:[#allocation6 + $0x3b8] sm:$0xff] }
  0xc9   : > { %v3124_v21 = vcombine.high %v306_v9, %v314_v10  ;;  %v3123_v25 = vcombine.low %v306_v9, %v314_v10  ;;  %v410_v60 = vld [vmem:[#allocation6 + $0x3f0] sm:$0xff]  ;;  %v3665_v10 = vld [vmem:[#allocation9 + $0x48] sm:$0xff]  }
  0xca   : > { %1251 = vmatmul.mubr.bf16.vlgmr.msra.gmra.mrb[4].mxu0 %v4233_v12  ;;  %1292 = vmatmul.mubr.bf16.vlgmr.msra.gmra.mrb[4].mxu1 %v4233_v12  ;;  %v3664_v9 = vld [vmem:[#allocation9 + $0x80] sm:$0xff]  }
  0xcb   : > { %1301 = vmatpush1.bf16.msra.mxu0 %v3103_v15  ;;  %1342 = vmatpush1.bf16.msra.mxu1 %v3105_v17  ;;  %v315_v15 = vld [vmem:[#allocation6 + $0xf8] sm:$0xff]  ;;  %v3107_v17 = vcombine.low %v290_v1, %v298_v2  ;;  %v3205_v1 = vcombine.low %v387_v52, %v395_v53 }
  0xcc   : > { %1302 = vmatprep.subr.bf16.mxu0 %v3120_v18  ;;  %1343 = vmatprep.subr.bf16.mxu1 %v3122_v20  ;;  %v322_v18 = vld [vmem:[#allocation6 + $0x130] sm:$0xff]  ;;  %v3109_v20 = vcombine.low %v291_v5, %v299_v6  ;;  %v3126_v24 = vcombine.high %v307_v14, %v315_v15  ;;  %v3125_v28 = vcombine.low %v307_v14, %v315_v15  ;;  %v3667_v14 = vld [vmem:[#allocation9 + $0x8] sm:$0xff]  }
  0xcd   : > { %1332 = vmatprep.mubr.bf16.mxu0 %v3987_v0  ;;  %1373 = vmatprep.mubr.bf16.mxu1 %v3987_v0  ;;  %v3140_v29 = vcombine.high %v322_v18, %v330_v19  ;;  %v3139_v33 = vcombine.low %v322_v18, %v330_v19  ;;  %v3668_v15 = vld [vmem:[#allocation9 + $0x88] sm:$0xff]   ;;  %v3671_v18 = vld [vmem:[#allocation9 + $0x10] sm:$0xff]  }
  0xce   : > { %v3672_v19 = vld [vmem:[#allocation9 + $0x90] sm:$0xff]  }
  0xcf   : > { %1303 = vmatpush1.bf16.msra.mxu0 %v3119_v23  ;;  %1344 = vmatpush1.bf16.msra.mxu1 %v3121_v26  ;;  %v331_v23 = vld [vmem:[#allocation6 + $0x178] sm:$0xff]  ;;  %v338_v26 = vld [vmem:[#allocation6 + $0x1b0] sm:$0xff] }
  0xd0   : > { %1304 = vmatprep.subr.bf16.mxu0 %v3136_v27  ;;  %1345 = vmatprep.subr.bf16.mxu1 %v3138_v30  ;;  %v346_v27 = vld [vmem:[#allocation6 + $0x1f0] sm:$0xff]  ;;  %v339_v30 = vld [vmem:[#allocation6 + $0x1b8] sm:$0xff]  ;;  %v3142_v32 = vcombine.high %v323_v22, %v331_v23 }
  0xd1   : > { %v3156_v36 = vcombine.high %v338_v26, %v346_v27  ;;  %v3155_v40 = vcombine.low %v338_v26, %v346_v27  ;;  %v3679_v26 = vld [vmem:[#allocation9 + $0x20] sm:$0xff]  }
  0xd2   : > { %v3680_v27 = vld [vmem:[#allocation9 + $0xa0] sm:$0xff]  }
  0xd3   : > { %1305 = vmatpush1.bf16.msra.mxu0 %v3135_v31  ;;  %1346 = vmatpush1.bf16.msra.mxu1 %v3137_v34  ;;  %v347_v31 = vld [vmem:[#allocation6 + $0x1f8] sm:$0xff]  ;;  %v354_v34 = vld [vmem:[#allocation6 + $0x230] sm:$0xff] }
  0xd4   : > { %1306 = vmatprep.subr.bf16.mxu0 %v3152_v35  ;;  %1347 = vmatprep.subr.bf16.mxu1 %v3154_v38  ;;  %v3141_v35 = vcombine.low %v323_v22, %v331_v23  ;;  %v363_v38 = vld [vmem:[#allocation6 + $0x278] sm:$0xff]  ;;  %v3675_v22 = vld [vmem:[#allocation9 + $0x18] sm:$0xff]  }
  0xd5   : > { %v3676_v23 = vld [vmem:[#allocation9 + $0x98] sm:$0xff]  }
  0xd7   : > { %1307 = vmatpush1.bf16.msra.mxu0 %v3151_v39  ;;  %1348 = vmatpush1.bf16.msra.mxu1 %v3153_v42  ;;  %v3158_v39 = vcombine.high %v339_v30, %v347_v31  ;;  %v378_v42 = vld [vmem:[#allocation6 + $0x2f0] sm:$0xff] }
  0xd8   : > { %1308 = vmatprep.subr.bf16.mxu0 %v3168_v43  ;;  %1349 = vmatprep.subr.bf16.mxu1 %v3170_v46  ;;  %v3157_v43 = vcombine.low %v339_v30, %v347_v31  ;;  %v3174_v46 = vcombine.high %v355_v37, %v363_v38  ;;  %v3683_v30 = vld [vmem:[#allocation9 + $0x28] sm:$0xff]  }
  0xd9   : > { %v3684_v31 = vld [vmem:[#allocation9 + $0xa8] sm:$0xff]  }
  0xdb   : > { %1309 = vmatpush1.bf16.msra.mxu0 %v3167_v47  ;;  %1350 = vmatpush1.bf16.msra.mxu1 %v3169_v50  ;;  %v3173_v50 = vcombine.low %v355_v37, %v363_v38  ;;  %v3691_v37 = vld [vmem:[#allocation9 + $0x38] sm:$0xff]  }
  0xdc   : > { %1310 = vmatprep.subr.bf16.mxu0 %v3184_v51  ;;  %1351 = vmatprep.subr.bf16.mxu1 %v3186_v54  ;;  %v3188_v51 = vcombine.high %v370_v41, %v378_v42  ;;  %v3190_v54 = vcombine.high %v371_v44, %v379_v45  ;;  %v3692_v38 = vld [vmem:[#allocation9 + $0xb8] sm:$0xff]  }
  0xdf   : > { %1311 = vmatpush1.bf16.msra.mxu0 %v3183_v55  ;;  %1352 = vmatpush1.bf16.msra.mxu1 %v3185_v58  ;;  %v3187_v55 = vcombine.low %v370_v41, %v378_v42  ;;  %v3206_v58 = vcombine.high %v387_v52, %v395_v53  ;;  %v416_v41 = vlaneseq }
  0xe0   : > { %1312 = vmatprep.subr.bf16.mxu0 %v3200_v59  ;;  %1353 = vmatprep.subr.bf16.mxu1 %v3202_v62  ;;  %v402_v59 = vld [vmem:[#allocation6 + $0x3b0] sm:$0xff]  ;;  %v411_v62 = vld [vmem:[#allocation6 + $0x3f8] sm:$0xff] }
  0xe1   : > { %v3220_v2 = vcombine.high %v402_v59, %v410_v60  ;;  %v3219_v5 = vcombine.low %v402_v59, %v410_v60  ;;  %v3221_v6 = vcombine.low %v403_v61, %v411_v62  ;;  %v4248_v42 = vshrl.u32 %v416_v41, 7  ;;  %v3720_v41 = vld [vmem:[#allocation9 + $0x1b0] sm:$0xff]  }
  0xe3   : > { %1313 = vmatpush1.bf16.msra.mxu0 %v3199_v63  ;;  %1354 = vmatpush1.bf16.msra.mxu1 %v3201_v3  ;;  %v3203_v63 = vcombine.low %v386_v48, %v394_v49  ;;  %v3222_v3 = vcombine.high %v403_v61, %v411_v62  ;;  %v426_v44 = vsub.s32 2, %v4248_v42  ;;  %v422_v45 = vsub.s32 1, %v4248_v42 }
  0xe4   : > { %1314 = vmatprep.subr.bf16.mxu0 %v3216_v4  ;;  %1355 = vmatprep.subr.bf16.mxu1 %v3218_v7  ;;  %v3661_v4 = vld [vmem:[#allocation9 + $0x40] sm:$0xff]  }
  0xe5   : > { %v3662_v7 = vld [vmem:[#allocation9 + $0xc0] sm:$0xff]  }
  0xe7   : > { %1315 = vmatpush1.bf16.msra.mxu0 %v3215_v8  ;;  %1356 = vmatpush1.bf16.msra.mxu1 %v3217_v11  ;;  %v3663_v8 = vld [vmem:[#allocation9] sm:$0xff]   ;;  %v3666_v11 = vld [vmem:[#allocation9 + $0xc8] sm:$0xff]  }
  0xe8   : > { %1382 = vmatprep.subr.bf16.mxu0 %v3108_v13  ;;  %1423 = vmatprep.subr.bf16.mxu1 %v3110_v16  ;;  %v3789_v13 = vld [vmem:[%s4216_s17] sm:$0xf]  ;;  %v3669_v16 = vld [vmem:[#allocation9 + $0x50] sm:$0xff]  }
  0xea   : > { %1333 = vmatmul.mubr.bf16.vlgmr.msra.gmra.mrb[8].mxu0 %v4233_v12  ;;  %1374 = vmatmul.mubr.bf16.vlgmr.msra.gmra.mrb[8].mxu1 %v4233_v12  ;;  %v362_v12 = vld [vmem:[#allocation6 + $0x270] sm:$0xff] }
  0xeb   : > { %1383 = vmatpush1.bf16.msra.mxu0 %v3107_v17  ;;  %1424 = vmatpush1.bf16.msra.mxu1 %v3109_v20  ;;  %v3171_v47 = vcombine.low %v354_v34, %v362_v12  ;;  %v3670_v17 = vld [vmem:[#allocation9 + $0xd0] sm:$0xff]   ;;  %v3673_v20 = vld [vmem:[#allocation9 + $0x58] sm:$0xff]  }
  0xec   : > { %1384 = vmatprep.subr.bf16.mxu0 %v3124_v21  ;;  %1425 = vmatprep.subr.bf16.mxu1 %v3126_v24  ;;  %v3674_v21 = vld [vmem:[#allocation9 + $0xd8] sm:$0xff]   ;;  %v3677_v24 = vld [vmem:[#allocation9 + $0x60] sm:$0xff]  }
  0xed   : > { %1414 = vmatprep.mubr.bf16.mxu0 %v3987_v0  ;;  %1455 = vmatprep.mubr.bf16.mxu1 %v3987_v0  ;;  %v3172_v0 = vcombine.high %v354_v34, %v362_v12  ;;  %v3687_v34 = vld [vmem:[#allocation9 + $0x30] sm:$0xff]  }
  0xee   : > { %v3688_v12 = vld [vmem:[#allocation9 + $0xb0] sm:$0xff]  }
  0xef   : > { %1385 = vmatpush1.bf16.msra.mxu0 %v3123_v25  ;;  %1426 = vmatpush1.bf16.msra.mxu1 %v3125_v28  ;;  %v3678_v25 = vld [vmem:[#allocation9 + $0xe0] sm:$0xff]   ;;  %v3681_v28 = vld [vmem:[#allocation9 + $0x68] sm:$0xff]  }
  0xf0   : > { %1386 = vmatprep.subr.bf16.mxu0 %v3140_v29  ;;  %1427 = vmatprep.subr.bf16.mxu1 %v3142_v32  ;;  %v3682_v29 = vld [vmem:[#allocation9 + $0xe8] sm:$0xff]   ;;  %v3685_v32 = vld [vmem:[#allocation9 + $0x70] sm:$0xff]  }
  0xf3   : > { %1387 = vmatpush1.bf16.msra.mxu0 %v3139_v33  ;;  %1428 = vmatpush1.bf16.msra.mxu1 %v3141_v35  ;;  %v3686_v33 = vld [vmem:[#allocation9 + $0xf0] sm:$0xff]   ;;  %v3689_v35 = vld [vmem:[#allocation9 + $0x78] sm:$0xff]  }
  0xf4   : > { %1388 = vmatprep.subr.bf16.mxu0 %v3156_v36  ;;  %1429 = vmatprep.subr.bf16.mxu1 %v3158_v39  ;;  %v3690_v36 = vld [vmem:[#allocation9 + $0xf8] sm:$0xff]   ;;  %v3693_v39 = vld [vmem:[#allocation9 + $0x140] sm:$0xff]  }
  0xf7   : > { %1389 = vmatpush1.bf16.msra.mxu0 %v3155_v40  ;;  %1430 = vmatpush1.bf16.msra.mxu1 %v3157_v43  ;;  %v3694_v40 = vld [vmem:[#allocation9 + $0x1c0] sm:$0xff]   ;;  %v418_v43 = vsub.s32 0, %v4248_v42 }
  0xf8   : > { %1390 = vmatprep.subr.bf16.mxu0 %v3172_v0  ;;  %1431 = vmatprep.subr.bf16.mxu1 %v3174_v46  ;;  %v4251_v0 = vld [vmem:[#allocation8] sm:$0xff]  ;;  %v430_v46 = vsub.s32 3, %v4248_v42 }
  0xf9   : > { %v427_v48 = vrot.slane %v4251_v0, %v426_v44  ;;  %v423_v49 = vrot.slane %v4251_v0, %v422_v45 }
  0xfb   : > { %1391 = vmatpush1.bf16.msra.mxu0 %v3171_v47  ;;  %1432 = vmatpush1.bf16.msra.mxu1 %v3173_v50  ;;  %v419_v47 = vrot.slane %v4251_v0, %v418_v43  ;;  %v431_v50 = vrot.slane %v4251_v0, %v430_v46 }
  0xfc   : > { %1392 = vmatprep.subr.bf16.mxu0 %v3188_v51  ;;  %1433 = vmatprep.subr.bf16.mxu1 %v3190_v54 }
  0xff   : > { %1393 = vmatpush1.bf16.msra.mxu0 %v3187_v55  ;;  %1434 = vmatpush1.bf16.msra.mxu1 %v3189_v56 }
 0x100   : > { %1394 = vmatprep.subr.bf16.mxu0 %v3204_v57  ;;  %1435 = vmatprep.subr.bf16.mxu1 %v3206_v58 }
 0x103   : > { %1395 = vmatpush1.bf16.msra.mxu0 %v3203_v63  ;;  %1436 = vmatpush1.bf16.msra.mxu1 %v3205_v1 }
 0x104   : > { %1396 = vmatprep.subr.bf16.mxu0 %v3220_v2  ;;  %1437 = vmatprep.subr.bf16.mxu1 %v3222_v3 }
 0x107   : > { %1397 = vmatpush1.bf16.msra.mxu0 %v3219_v5  ;;  %1438 = vmatpush1.bf16.msra.mxu1 %v3221_v6 }
 0x108   : > { %3404 = vmatprep.subr.bf16.mxu0 %v3661_v4  ;;  %3426 = vmatprep.subr.bf16.mxu1 %v3662_v7  ;;  %v3695_v7 = vld [vmem:[#allocation9 + $0x100] sm:$0xff]  }
 0x10a   : > { %1415 = vmatmul.mubr.bf16.vlgmr.msra.gmra.mrb[12].mxu0 %v3789_v13  ;;  %1456 = vmatmul.mubr.bf16.vlgmr.msra.gmra.mrb[12].mxu1 %v3789_v13  ;;  %v3699_v13 = vld [vmem:[#allocation9 + $0x108] sm:$0xff]  }
 0x10b   : > { %3405 = vmatpush3.bf16.msra.mxu0 %v3663_v8  ;;  %3427 = vmatpush3.bf16.msra.mxu1 %v3664_v9  ;;  %v3696_v9 = vld [vmem:[#allocation9 + $0x180] sm:$0xff]  }
 0x10c   : > { %3406 = vmatprep.subr.bf16.mxu0 %v3665_v10  ;;  %3428 = vmatprep.subr.bf16.mxu1 %v3666_v11  ;;  %v3697_v10 = vld [vmem:[#allocation9 + $0x148] sm:$0xff]  }
 0x10d   : > { %v3698_v11 = vld [vmem:[#allocation9 + $0x1c8] sm:$0xff]  }
 0x10f   : > { %3407 = vmatpush3.bf16.msra.mxu0 %v3667_v14  ;;  %3429 = vmatpush3.bf16.msra.mxu1 %v3668_v15  ;;  %v3700_v14 = vld [vmem:[#allocation9 + $0x188] sm:$0xff]   ;;  %v3701_v15 = vld [vmem:[#allocation9 + $0x150] sm:$0xff]  }
 0x110   : > { %3408 = vmatprep.subr.bf16.mxu0 %v3669_v16  ;;  %3430 = vmatprep.subr.bf16.mxu1 %v3670_v17  ;;  %v3702_v16 = vld [vmem:[#allocation9 + $0x1d0] sm:$0xff]  }
 0x111   : > { %v3703_v17 = vld [vmem:[#allocation9 + $0x110] sm:$0xff]  }
 0x113   : > { %3409 = vmatpush3.bf16.msra.mxu0 %v3671_v18  ;;  %3431 = vmatpush3.bf16.msra.mxu1 %v3672_v19  ;;  %v3704_v18 = vld [vmem:[#allocation9 + $0x190] sm:$0xff]   ;;  %v3705_v19 = vld [vmem:[#allocation9 + $0x158] sm:$0xff]  }
 0x114   : > { %3410 = vmatprep.subr.bf16.mxu0 %v3673_v20  ;;  %3432 = vmatprep.subr.bf16.mxu1 %v3674_v21  ;;  %v3706_v20 = vld [vmem:[#allocation9 + $0x1d8] sm:$0xff]  }
 0x115   : > { %v3707_v21 = vld [vmem:[#allocation9 + $0x118] sm:$0xff]  }
 0x117   : > { %3411 = vmatpush3.bf16.msra.mxu0 %v3675_v22  ;;  %3433 = vmatpush3.bf16.msra.mxu1 %v3676_v23  ;;  %v3708_v22 = vld [vmem:[#allocation9 + $0x198] sm:$0xff]   ;;  %v3709_v23 = vld [vmem:[#allocation9 + $0x160] sm:$0xff]  }
 0x118   : > { %3412 = vmatprep.subr.bf16.mxu0 %v3677_v24  ;;  %3434 = vmatprep.subr.bf16.mxu1 %v3678_v25  ;;  %v3710_v24 = vld [vmem:[#allocation9 + $0x1e0] sm:$0xff]  }
 0x119   : > { %v3711_v25 = vld [vmem:[#allocation9 + $0x120] sm:$0xff]  }
 0x11b   : > { %3413 = vmatpush3.bf16.msra.mxu0 %v3679_v26  ;;  %3435 = vmatpush3.bf16.msra.mxu1 %v3680_v27  ;;  %v3712_v26 = vld [vmem:[#allocation9 + $0x1a0] sm:$0xff]   ;;  %v3713_v27 = vld [vmem:[#allocation9 + $0x168] sm:$0xff]  }
 0x11c   : > { %3414 = vmatprep.subr.bf16.mxu0 %v3681_v28  ;;  %3436 = vmatprep.subr.bf16.mxu1 %v3682_v29  ;;  %v3714_v28 = vld [vmem:[#allocation9 + $0x1e8] sm:$0xff]   ;;  %v434_v29 = vsub.s32 4, %v4248_v42 }
 0x11f   : > { %3415 = vmatpush3.bf16.msra.mxu0 %v3683_v30  ;;  %3437 = vmatpush3.bf16.msra.mxu1 %v3684_v31  ;;  %v3715_v30 = vld [vmem:[#allocation9 + $0x128] sm:$0xff]   ;;  %v442_v31 = vsub.s32 6, %v4248_v42 }
 0x120   : > { %3416 = vmatprep.subr.bf16.mxu0 %v3685_v32  ;;  %3438 = vmatprep.subr.bf16.mxu1 %v3686_v33  ;;  %v438_v32 = vsub.s32 5, %v4248_v42  ;;  %v3716_v33 = vld [vmem:[#allocation9 + $0x1a8] sm:$0xff]  }
 0x123   : > { %3417 = vmatpush3.bf16.msra.mxu0 %v3687_v34  ;;  %3439 = vmatpush3.bf16.msra.mxu1 %v3688_v12  ;;  %v446_v34 = vsub.s32 7, %v4248_v42  ;;  %v3717_v12 = vld [vmem:[#allocation9 + $0x170] sm:$0xff]  }
 0x124   : > { %3418 = vmatprep.subr.bf16.mxu0 %v3689_v35  ;;  %3440 = vmatprep.subr.bf16.mxu1 %v3690_v36  ;;  %v3718_v35 = vld [vmem:[#allocation9 + $0x1f0] sm:$0xff]   ;;  %v435_v36 = vrot.slane %v4251_v0, %v434_v29 }
 0x127   : > { %3419 = vmatpush3.bf16.msra.mxu0 %v3691_v37  ;;  %3441 = vmatpush3.bf16.msra.mxu1 %v3692_v38  ;;  %v443_v37 = vrot.slane %v4251_v0, %v442_v31  ;;  %v439_v38 = vrot.slane %v4251_v0, %v438_v32 }
 0x128   : > { %3448 = vmatprep.subr.bf16.mxu0 %v3693_v39  ;;  %3470 = vmatprep.subr.bf16.mxu1 %v3694_v40  ;;  %v3719_v39 = vld [vmem:[#allocation9 + $0x130] sm:$0xff]   ;;  %v447_v40 = vrot.slane %v4251_v0, %v446_v34 }
 0x17d   : > { %v1170_v51 = vpop.f32.mrb[0].mxu0  ;;  %v1211_v53 = vpop.f32.mrb[0].mxu1 }
 0x17e   : > { %v1171_v52 = vadd.f32 %v1170_v51, %v419_v47  ;;  %v1172_v54 = vpop.f32.mrb[1].mxu0  ;;  %v1212_v55 = vadd.f32 %v1211_v53, %v427_v48  ;;  %v1213_v57 = vpop.f32.mrb[1].mxu1  ;;  %v3721_v47 = vld [vmem:[#allocation9 + $0x178] sm:$0xff]  }
 0x17f   : > { %v1173_v56 = vadd.f32 %v1172_v54, %v423_v49  ;;  %v1174_v58 = vpop.f32.mrb[2].mxu0  ;;  %v1214_v60 = vadd.f32 %v1213_v57, %v431_v50  ;;  %v1215_v61 = vpop.f32.mrb[2].mxu1  ;;  %v3722_v49 = vld [vmem:[#allocation9 + $0x1f8] sm:$0xff]  }
 0x180   : > { %v1464_v59 = vmax.f32 %v1171_v52, 0.0  ;;  %v1175_v62 = vpop.f32.mrb[3].mxu0  ;;  %v1466_v63 = vmax.f32 %v1212_v55, 0.0  ;;  %v1216_v2 = vpop.f32.mrb[3].mxu1  ;;  %v3723_v57 = vld [vmem:[#allocation9 + $0x138] sm:$0xff]  }
 0x181   : > { %v1465_v1 = vmax.f32 %v1173_v56, 0.0  ;;  %v1467_v4 = vmax.f32 %v1214_v60, 0.0  ;;  %v3724_v61 = vld [vmem:[#allocation9 + $0x1b8] sm:$0xff]   ;;  %v3725_v62 = vld [vmem:[#allocation9 + $0x240] sm:$0xff]  }
 0x182   : > { %v3388_v3 = vpack.c.bf16 %v1464_v59, %v1464_v59  ;;  %v3390_v5 = vpack.c.bf16 %v1466_v63, %v1466_v63 }
 0x183   : > { %v3389_v6 = vpack.c.bf16 %v1465_v1, %v1465_v1  ;;  %v3391_v8 = vpack.c.bf16 %v1467_v4, %v1467_v4 }
 0x185   : > { %2679 = vmatprep.mubr.bf16.mxu0 %v3389_v6  ;;  %2719 = vmatprep.mubr.bf16.mxu1 %v3391_v8  ;;  %v3727_v8 = vld [vmem:[#allocation9 + $0x200] sm:$0xff]  }
 0x186   : > { %2680 = vmatmul.mubr.bf16.vlgmr.msra.gmra.mrb[16].mxu0 %v3388_v3  ;;  %2720 = vmatmul.mubr.bf16.vlgmr.msra.gmra.mrb[16].mxu1 %v3390_v5  ;;  %v3726_v3 = vld [vmem:[#allocation9 + $0x2c0] sm:$0xff]  }
 0x187   : > { %3449 = vmatpush3.bf16.msra.mxu0 %v3695_v7  ;;  %3471 = vmatpush3.bf16.msra.mxu1 %v3696_v9 }
 0x188   : > { %3450 = vmatprep.subr.bf16.mxu0 %v3697_v10  ;;  %3472 = vmatprep.subr.bf16.mxu1 %v3698_v11  ;;  %v3728_v10 = vld [vmem:[#allocation9 + $0x280] sm:$0xff]   ;;  %v3729_v11 = vld [vmem:[#allocation9 + $0x248] sm:$0xff]  }
 0x18b   : > { %3451 = vmatpush3.bf16.msra.mxu0 %v3699_v13  ;;  %3473 = vmatpush3.bf16.msra.mxu1 %v3700_v14  ;;  %v3730_v13 = vld [vmem:[#allocation9 + $0x2c8] sm:$0xff]  }
 0x18c   : > { %3452 = vmatprep.subr.bf16.mxu0 %v3701_v15  ;;  %3474 = vmatprep.subr.bf16.mxu1 %v3702_v16  ;;  %v3731_v14 = vld [vmem:[#allocation9 + $0x208] sm:$0xff]   ;;  %v3733_v16 = vld [vmem:[#allocation9 + $0x250] sm:$0xff]  }
 0x18d   : > { %v3732_v15 = vld [vmem:[#allocation9 + $0x288] sm:$0xff]  }
 0x18f   : > { %3453 = vmatpush3.bf16.msra.mxu0 %v3703_v17  ;;  %3475 = vmatpush3.bf16.msra.mxu1 %v3704_v18  ;;  %v3734_v17 = vld [vmem:[#allocation9 + $0x2d0] sm:$0xff]  }
 0x190   : > { %3454 = vmatprep.subr.bf16.mxu0 %v3705_v19  ;;  %3476 = vmatprep.subr.bf16.mxu1 %v3706_v20  ;;  %v3735_v18 = vld [vmem:[#allocation9 + $0x210] sm:$0xff]   ;;  %v3737_v20 = vld [vmem:[#allocation9 + $0x258] sm:$0xff]  }
 0x191   : > { %v3736_v19 = vld [vmem:[#allocation9 + $0x290] sm:$0xff]  }
 0x193   : > { %3455 = vmatpush3.bf16.msra.mxu0 %v3707_v21  ;;  %3477 = vmatpush3.bf16.msra.mxu1 %v3708_v22  ;;  %v3738_v21 = vld [vmem:[#allocation9 + $0x2d8] sm:$0xff]  }
 0x194   : > { %3456 = vmatprep.subr.bf16.mxu0 %v3709_v23  ;;  %3478 = vmatprep.subr.bf16.mxu1 %v3710_v24  ;;  %v3739_v22 = vld [vmem:[#allocation9 + $0x218] sm:$0xff]   ;;  %v3741_v24 = vld [vmem:[#allocation9 + $0x260] sm:$0xff]  }
 0x195   : > { %v3740_v23 = vld [vmem:[#allocation9 + $0x298] sm:$0xff]  }
 0x197   : > { %3457 = vmatpush3.bf16.msra.mxu0 %v3711_v25  ;;  %3479 = vmatpush3.bf16.msra.mxu1 %v3712_v26  ;;  %v3742_v25 = vld [vmem:[#allocation9 + $0x2e0] sm:$0xff]  }
 0x198   : > { %3458 = vmatprep.subr.bf16.mxu0 %v3713_v27  ;;  %3480 = vmatprep.subr.bf16.mxu1 %v3714_v28  ;;  %v3743_v26 = vld [vmem:[#allocation9 + $0x220] sm:$0xff]   ;;  %v3745_v28 = vld [vmem:[#allocation9 + $0x268] sm:$0xff]  }
 0x199   : > { %v3744_v27 = vld [vmem:[#allocation9 + $0x2a0] sm:$0xff]  }
 0x19b   : > { %3459 = vmatpush3.bf16.msra.mxu0 %v3715_v30  ;;  %3481 = vmatpush3.bf16.msra.mxu1 %v3716_v33  ;;  %v3746_v30 = vld [vmem:[#allocation9 + $0x2e8] sm:$0xff]  }
 0x19c   : > { %3460 = vmatprep.subr.bf16.mxu0 %v3717_v12  ;;  %3482 = vmatprep.subr.bf16.mxu1 %v3718_v35  ;;  %v3747_v33 = vld [vmem:[#allocation9 + $0x228] sm:$0xff]   ;;  %v4284_v12 = vld [vmem:[#allocation8 + $0x8] sm:$0xff] }
 0x19d   : > { %v1252_v48 = vpop.f32.mrb[4].mxu0  ;;  %v1293_v51 = vpop.f32.mrb[4].mxu1  ;;  %v3748_v35 = vld [vmem:[#allocation9 + $0x2a8] sm:$0xff]  }
 0x19e   : > { %v1253_v50 = vadd.f32 %v1252_v48, %v435_v36  ;;  %v1254_v52 = vpop.f32.mrb[5].mxu0  ;;  %v1294_v53 = vadd.f32 %v1293_v51, %v443_v37  ;;  %v1295_v55 = vpop.f32.mrb[5].mxu1  ;;  %v3749_v36 = vld [vmem:[#allocation9 + $0x270] sm:$0xff]  }
 0x19f   : > { %v1255_v54 = vadd.f32 %v1254_v52, %v439_v38  ;;  %v1256_v56 = vpop.f32.mrb[6].mxu0  ;;  %3461 = vmatpush3.bf16.msra.mxu0 %v3719_v39  ;;  %v1296_v59 = vadd.f32 %v1295_v55, %v447_v40  ;;  %v1297_v60 = vpop.f32.mrb[6].mxu1  ;;  %3483 = vmatpush3.bf16.msra.mxu1 %v3720_v41  ;;  %v3750_v37 = vld [vmem:[#allocation9 + $0x2f0] sm:$0xff]   ;;  %v451_v38 = vrot.slane %v4284_v12, %v418_v43  ;;  %v3754_v43 = vld [vmem:[#allocation9 + $0x2f8] sm:$0xff]  }
 0x1a0   : > { %v1468_v58 = vmax.f32 %v1253_v50, 0.0  ;;  %v1257_v0 = vpop.f32.mrb[7].mxu0  ;;  %3462 = vmatprep.subr.bf16.mxu0 %v3721_v47  ;;  %v1470_v63 = vmax.f32 %v1294_v53, 0.0  ;;  %v1298_v2 = vpop.f32.mrb[7].mxu1  ;;  %3484 = vmatprep.subr.bf16.mxu1 %v3722_v49  ;;  %v459_v39 = vrot.slane %v4284_v12, %v426_v44  ;;  %v455_v40 = vrot.slane %v4284_v12, %v422_v45  ;;  %v3751_v41 = vld [vmem:[#allocation9 + $0x230] sm:$0xff]   ;;  %v3753_v49 = vld [vmem:[#allocation9 + $0x278] sm:$0xff]  }
 0x1a1   : > { %v1469_v1 = vmax.f32 %v1255_v54, 0.0  ;;  %v1471_v5 = vmax.f32 %v1296_v59, 0.0  ;;  %v463_v47 = vrot.slane %v4284_v12, %v430_v46  ;;  %v3752_v48 = vld [vmem:[#allocation9 + $0x2b0] sm:$0xff]   ;;  %v3755_v45 = vld [vmem:[#allocation9 + $0x238] sm:$0xff]   ;;  %v3757_v0 = vld [vmem:[#allocation9 + $0x340] sm:$0xff]  }
 0x1a2   : > { %v3392_v4 = vpack.c.bf16 %v1468_v58, %v1468_v58  ;;  %v3394_v6 = vpack.c.bf16 %v1470_v63, %v1470_v63  ;;  %v3756_v60 = vld [vmem:[#allocation9 + $0x2b8] sm:$0xff]  }
 0x1a3   : > { %v3393_v7 = vpack.c.bf16 %v1469_v1, %v1469_v1  ;;  %3463 = vmatpush3.bf16.msra.mxu0 %v3723_v57  ;;  %v3395_v9 = vpack.c.bf16 %v1471_v5, %v1471_v5  ;;  %3485 = vmatpush3.bf16.msra.mxu1 %v3724_v61  ;;  %v3758_v1 = vld [vmem:[#allocation9 + $0x3c0] sm:$0xff]  }
 0x1a4   : > { %3492 = vmatprep.subr.bf16.mxu0 %v3725_v62  ;;  %3514 = vmatprep.subr.bf16.mxu1 %v3726_v3 }
 0x1a5   : > { %2759 = vmatprep.mubr.bf16.mxu0 %v3393_v7  ;;  %2799 = vmatprep.mubr.bf16.mxu1 %v3395_v9  ;;  %v3761_v9 = vld [vmem:[#allocation9 + $0x348] sm:$0xff]  }
 0x1a6   : > { %2760 = vmatmul.mubr.bf16.vlgmr.msra.gmra.mrb[20].mxu0 %v3392_v4  ;;  %2800 = vmatmul.mubr.bf16.vlgmr.msra.gmra.mrb[20].mxu1 %v3394_v6  ;;  %v3759_v6 = vld [vmem:[#allocation9 + $0x300] sm:$0xff]  }
 0x1a7   : > { %3493 = vmatpush3.bf16.msra.mxu0 %v3727_v8  ;;  %3515 = vmatpush3.bf16.msra.mxu1 %v3728_v10  ;;  %v3760_v8 = vld [vmem:[#allocation9 + $0x380] sm:$0xff]   ;;  %v3762_v10 = vld [vmem:[#allocation9 + $0x3c8] sm:$0xff]  }
 0x1a8   : > { %3494 = vmatprep.subr.bf16.mxu0 %v3729_v11  ;;  %3516 = vmatprep.subr.bf16.mxu1 %v3730_v13  ;;  %v3763_v11 = vld [vmem:[#allocation9 + $0x308] sm:$0xff]  }
 0x1a9   : > { %v3764_v13 = vld [vmem:[#allocation9 + $0x388] sm:$0xff]  }
 0x1ab   : > { %3495 = vmatpush3.bf16.msra.mxu0 %v3731_v14  ;;  %3517 = vmatpush3.bf16.msra.mxu1 %v3732_v15  ;;  %v3765_v14 = vld [vmem:[#allocation9 + $0x350] sm:$0xff]  }
 0x1ac   : > { %3496 = vmatprep.subr.bf16.mxu0 %v3733_v16  ;;  %3518 = vmatprep.subr.bf16.mxu1 %v3734_v17  ;;  %v3766_v15 = vld [vmem:[#allocation9 + $0x3d0] sm:$0xff]  }
 0x1ad   : > { %v3767_v16 = vld [vmem:[#allocation9 + $0x310] sm:$0xff]  }
 0x1ae   : > { %v3768_v17 = vld [vmem:[#allocation9 + $0x390] sm:$0xff]  }
 0x1af   : > { %3497 = vmatpush3.bf16.msra.mxu0 %v3735_v18  ;;  %3519 = vmatpush3.bf16.msra.mxu1 %v3736_v19  ;;  %v3769_v18 = vld [vmem:[#allocation9 + $0x358] sm:$0xff]  }
 0x1b0   : > { %3498 = vmatprep.subr.bf16.mxu0 %v3737_v20  ;;  %3520 = vmatprep.subr.bf16.mxu1 %v3738_v21  ;;  %v3770_v19 = vld [vmem:[#allocation9 + $0x3d8] sm:$0xff]  }
 0x1b1   : > { %v3771_v20 = vld [vmem:[#allocation9 + $0x318] sm:$0xff]  }
 0x1b2   : > { %v3772_v21 = vld [vmem:[#allocation9 + $0x398] sm:$0xff]  }
 0x1b3   : > { %3499 = vmatpush3.bf16.msra.mxu0 %v3739_v22  ;;  %3521 = vmatpush3.bf16.msra.mxu1 %v3740_v23  ;;  %v3773_v22 = vld [vmem:[#allocation9 + $0x360] sm:$0xff]  }
 0x1b4   : > { %3500 = vmatprep.subr.bf16.mxu0 %v3741_v24  ;;  %3522 = vmatprep.subr.bf16.mxu1 %v3742_v25  ;;  %v3774_v23 = vld [vmem:[#allocation9 + $0x3e0] sm:$0xff]  }
 0x1b5   : > { %v3775_v24 = vld [vmem:[#allocation9 + $0x320] sm:$0xff]  }
 0x1b6   : > { %v3776_v25 = vld [vmem:[#allocation9 + $0x3a0] sm:$0xff]  }
 0x1b7   : > { %3501 = vmatpush3.bf16.msra.mxu0 %v3743_v26  ;;  %3523 = vmatpush3.bf16.msra.mxu1 %v3744_v27  ;;  %v3777_v26 = vld [vmem:[#allocation9 + $0x368] sm:$0xff]  }
 0x1b8   : > { %3502 = vmatprep.subr.bf16.mxu0 %v3745_v28  ;;  %3524 = vmatprep.subr.bf16.mxu1 %v3746_v30  ;;  %v3778_v27 = vld [vmem:[#allocation9 + $0x3e8] sm:$0xff]  }
 0x1b9   : > { %v3779_v28 = vld [vmem:[#allocation9 + $0x328] sm:$0xff]  }
 0x1ba   : > { %v3780_v30 = vld [vmem:[#allocation9 + $0x3a8] sm:$0xff]  }
 0x1bb   : > { %3503 = vmatpush3.bf16.msra.mxu0 %v3747_v33  ;;  %3525 = vmatpush3.bf16.msra.mxu1 %v3748_v35  ;;  %v3781_v33 = vld [vmem:[#allocation9 + $0x370] sm:$0xff]  }
 0x1bc   : > { %3504 = vmatprep.subr.bf16.mxu0 %v3749_v36  ;;  %3526 = vmatprep.subr.bf16.mxu1 %v3750_v37  ;;  %v3782_v35 = vld [vmem:[#allocation9 + $0x3f0] sm:$0xff]   ;;  %v467_v36 = vrot.slane %v4284_v12, %v434_v29  ;;  %v475_v37 = vrot.slane %v4284_v12, %v442_v31  ;;  %v3786_v29 = vld [vmem:[#allocation9 + $0x3f8] sm:$0xff]  }
 0x1bd   : > { %v1334_v50 = vpop.f32.mrb[8].mxu0  ;;  %v1375_v52 = vpop.f32.mrb[8].mxu1 }
 0x1be   : > { %v1335_v51 = vadd.f32 %v1334_v50, %v451_v38  ;;  %v1336_v53 = vpop.f32.mrb[9].mxu0  ;;  %v1376_v44 = vadd.f32 %v1375_v52, %v459_v39  ;;  %v1377_v55 = vpop.f32.mrb[9].mxu1  ;;  %v471_v38 = vrot.slane %v4284_v12, %v438_v32  ;;  %v3783_v39 = vld [vmem:[#allocation9 + $0x330] sm:$0xff]   ;;  %v3787_v32 = vld [vmem:[#allocation9 + $0x338] sm:$0xff]  }
 0x1bf   : > { %v1337_v54 = vadd.f32 %v1336_v53, %v455_v40  ;;  %v1338_v56 = vpop.f32.mrb[10].mxu0  ;;  %3505 = vmatpush3.bf16.msra.mxu0 %v3751_v41  ;;  %v1378_v58 = vadd.f32 %v1377_v55, %v463_v47  ;;  %v1379_v59 = vpop.f32.mrb[10].mxu1  ;;  %3527 = vmatpush3.bf16.msra.mxu1 %v3752_v48  ;;  %v479_v40 = vrot.slane %v4284_v12, %v446_v34  ;;  %v3784_v41 = vld [vmem:[#allocation9 + $0x3b0] sm:$0xff]   ;;  %v3785_v47 = vld [vmem:[#allocation9 + $0x378] sm:$0xff]  }
 0x1c0   : > { %v1472_v57 = vmax.f32 %v1335_v51, 0.0  ;;  %v1339_v46 = vpop.f32.mrb[11].mxu0  ;;  %3506 = vmatprep.subr.bf16.mxu0 %v3753_v49  ;;  %v1474_v61 = vmax.f32 %v1376_v44, 0.0  ;;  %v1380_v63 = vpop.f32.mrb[11].mxu1  ;;  %3528 = vmatprep.subr.bf16.mxu1 %v3754_v43  ;;  %v3788_v12 = vld [vmem:[#allocation9 + $0x3b8] sm:$0xff]  }
 0x1c1   : > { %v1473_v62 = vmax.f32 %v1337_v54, 0.0  ;;  %v1475_v3 = vmax.f32 %v1378_v58, 0.0 }
 0x1c2   : > { %v3396_v2 = vpack.c.bf16 %v1472_v57, %v1472_v57  ;;  %v3398_v4 = vpack.c.bf16 %v1474_v61, %v1474_v61 }
 0x1c3   : > { %v3397_v5 = vpack.c.bf16 %v1473_v62, %v1473_v62  ;;  %3507 = vmatpush3.bf16.msra.mxu0 %v3755_v45  ;;  %v3399_v7 = vpack.c.bf16 %v1475_v3, %v1475_v3  ;;  %3529 = vmatpush3.bf16.msra.mxu1 %v3756_v60  ;;  %v3231_v62 = vld [vmem:[%s4366_s4] ss:$0 sm:$0xff] }
 0x1c4   : > { %3536 = vmatprep.subr.bf16.mxu0 %v3757_v0  ;;  %3558 = vmatprep.subr.bf16.mxu1 %v3758_v1 }
 0x1c5   : > { %2839 = vmatprep.mubr.bf16.mxu0 %v3397_v5  ;;  %2879 = vmatprep.mubr.bf16.mxu1 %v3399_v7 }
 0x1c6   : > { %2840 = vmatmul.mubr.bf16.vlgmr.msra.gmra.mrb[24].mxu0 %v3396_v2  ;;  %2880 = vmatmul.mubr.bf16.vlgmr.msra.gmra.mrb[24].mxu1 %v3398_v4 }
 0x1c7   : > { %3537 = vmatpush3.bf16.msra.mxu0 %v3759_v6  ;;  %3559 = vmatpush3.bf16.msra.mxu1 %v3760_v8 }
 0x1c8   : > { %3538 = vmatprep.subr.bf16.mxu0 %v3761_v9  ;;  %3560 = vmatprep.subr.bf16.mxu1 %v3762_v10 }
 0x1cb   : > { %3539 = vmatpush3.bf16.msra.mxu0 %v3763_v11  ;;  %3561 = vmatpush3.bf16.msra.mxu1 %v3764_v13 }
 0x1cc   : > { %3540 = vmatprep.subr.bf16.mxu0 %v3765_v14  ;;  %3562 = vmatprep.subr.bf16.mxu1 %v3766_v15 }
 0x1cf   : > { %3541 = vmatpush3.bf16.msra.mxu0 %v3767_v16  ;;  %3563 = vmatpush3.bf16.msra.mxu1 %v3768_v17 }
 0x1d0   : > { %3542 = vmatprep.subr.bf16.mxu0 %v3769_v18  ;;  %3564 = vmatprep.subr.bf16.mxu1 %v3770_v19 }
 0x1d3   : > { %3543 = vmatpush3.bf16.msra.mxu0 %v3771_v20  ;;  %3565 = vmatpush3.bf16.msra.mxu1 %v3772_v21 }
 0x1d4   : > { %3544 = vmatprep.subr.bf16.mxu0 %v3773_v22  ;;  %3566 = vmatprep.subr.bf16.mxu1 %v3774_v23 }
 0x1d7   : > { %3545 = vmatpush3.bf16.msra.mxu0 %v3775_v24  ;;  %3567 = vmatpush3.bf16.msra.mxu1 %v3776_v25 }
 0x1d8   : > { %3546 = vmatprep.subr.bf16.mxu0 %v3777_v26  ;;  %3568 = vmatprep.subr.bf16.mxu1 %v3778_v27 }
 0x1db   : > { %3547 = vmatpush3.bf16.msra.mxu0 %v3779_v28  ;;  %3569 = vmatpush3.bf16.msra.mxu1 %v3780_v30 }
 0x1dc   : > { %3548 = vmatprep.subr.bf16.mxu0 %v3781_v33  ;;  %3570 = vmatprep.subr.bf16.mxu1 %v3782_v35 }
 0x1dd   : > { %v1416_v48 = vpop.f32.mrb[12].mxu0  ;;  %v1457_v50 = vpop.f32.mrb[12].mxu1 }
 0x1de   : > { %v1417_v49 = vadd.f32 %v1416_v48, %v467_v36  ;;  %v1418_v43 = vpop.f32.mrb[13].mxu0  ;;  %v1458_v31 = vadd.f32 %v1457_v50, %v475_v37  ;;  %v1459_v52 = vpop.f32.mrb[13].mxu1 }
 0x1df   : > { %v1419_v51 = vadd.f32 %v1418_v43, %v471_v38  ;;  %v1420_v53 = vpop.f32.mrb[14].mxu0  ;;  %3549 = vmatpush3.bf16.msra.mxu0 %v3783_v39  ;;  %v1460_v54 = vadd.f32 %v1459_v52, %v479_v40  ;;  %v1461_v42 = vpop.f32.mrb[14].mxu1  ;;  %3571 = vmatpush3.bf16.msra.mxu1 %v3784_v41 }
 0x1e0   : > { %v1476_v44 = vmax.f32 %v1417_v49, 0.0  ;;  %v1421_v34 = vpop.f32.mrb[15].mxu0  ;;  %3550 = vmatprep.subr.bf16.mxu0 %v3785_v47  ;;  %v1478_v55 = vmax.f32 %v1458_v31, 0.0  ;;  %v1462_v45 = vpop.f32.mrb[15].mxu1  ;;  %3572 = vmatprep.subr.bf16.mxu1 %v3786_v29 }
 0x1e1   : > { %v1477_v56 = vmax.f32 %v1419_v51, 0.0  ;;  %v1479_v57 = vmax.f32 %v1460_v54, 0.0 }
 0x1e2   : > { %v3402_v58 = vpack.c.bf16 %v1478_v55, %v1478_v55  ;;  %v3400_v46 = vpack.c.bf16 %v1476_v44, %v1476_v44 }
 0x1e3   : > { %v3401_v59 = vpack.c.bf16 %v1477_v56, %v1477_v56  ;;  %3551 = vmatpush3.bf16.msra.mxu0 %v3787_v32  ;;  %v3403_v60 = vpack.c.bf16 %v1479_v57, %v1479_v57  ;;  %3573 = vmatpush3.bf16.msra.mxu1 %v3788_v12 }
 0x1e5   : > { %2919 = vmatprep.mubr.bf16.mxu0 %v3401_v59  ;;  %2959 = vmatprep.mubr.bf16.mxu1 %v3403_v60 }
 0x1e6   : > { %2920 = vmatmul.mubr.bf16.vlgmr.msra.gmra.mrb[28].mxu0 %v3400_v46  ;;  %2960 = vmatmul.mubr.bf16.vlgmr.msra.gmra.mrb[28].mxu1 %v3402_v58 }
 0x259   : > { %v3420_v0 = vpop.f32.mrb[16].mxu0  ;;  %v3442_v61 = vpop.f32.mrb[16].mxu1 }
 0x25a   : > { %v3421_v63 = vpop.f32.mrb[17].mxu0  ;;  %v3443_v2 = vpop.f32.mrb[17].mxu1 }
 0x25b   : > { %v3422_v1 = vadd.f32 %v3421_v63, %v3420_v0  ;;  %v3423_v3 = vpop.f32.mrb[18].mxu0  ;;  %v3444_v4 = vadd.f32 %v3443_v2, %v3442_v61  ;;  %v3445_v5 = vpop.f32.mrb[18].mxu1 }
 0x25c   : > { %v3424_v6 = vpop.f32.mrb[19].mxu0  ;;  %v3446_v8 = vpop.f32.mrb[19].mxu1 }
 0x25d   : > { %v2682_v7 = vadd.f32 %v3422_v1, %v3231_v62 }
 0x25f   : > { %v2722_v9 = vadd.f32 %v3444_v4, %v2682_v7 }
 0x279   : > { %v3464_v10 = vpop.f32.mrb[20].mxu0  ;;  %v3486_v11 = vpop.f32.mrb[20].mxu1 }
 0x27a   : > { %v3465_v13 = vpop.f32.mrb[21].mxu0  ;;  %v3487_v15 = vpop.f32.mrb[21].mxu1 }
 0x27b   : > { %v3466_v14 = vadd.f32 %v3465_v13, %v3464_v10  ;;  %v3467_v16 = vpop.f32.mrb[22].mxu0  ;;  %v3488_v17 = vadd.f32 %v3487_v15, %v3486_v11  ;;  %v3489_v18 = vpop.f32.mrb[22].mxu1 }
 0x27c   : > { %v3468_v19 = vpop.f32.mrb[23].mxu0  ;;  %v3490_v21 = vpop.f32.mrb[23].mxu1 }
 0x27d   : > { %v2762_v20 = vadd.f32 %v3466_v14, %v2722_v9 }
 0x27f   : > { %v2802_v22 = vadd.f32 %v3488_v17, %v2762_v20 }
 0x299   : > { %v3508_v23 = vpop.f32.mrb[24].mxu0  ;;  %v3530_v24 = vpop.f32.mrb[24].mxu1 }
 0x29a   : > { %v3509_v25 = vpop.f32.mrb[25].mxu0  ;;  %v3531_v27 = vpop.f32.mrb[25].mxu1 }
 0x29b   : > { %v3510_v26 = vadd.f32 %v3509_v25, %v3508_v23  ;;  %v3511_v28 = vpop.f32.mrb[26].mxu0  ;;  %v3532_v30 = vadd.f32 %v3531_v27, %v3530_v24  ;;  %v3533_v33 = vpop.f32.mrb[26].mxu1 }
 0x29c   : > { %v3512_v35 = vpop.f32.mrb[27].mxu0  ;;  %v3534_v37 = vpop.f32.mrb[27].mxu1 }
 0x29d   : > { %v2842_v36 = vadd.f32 %v3510_v26, %v2802_v22 }
 0x29f   : > { %v2882_v38 = vadd.f32 %v3532_v30, %v2842_v36 }
 0x2b9   : > { %v3552_v39 = vpop.f32.mrb[28].mxu0  ;;  %v3574_v40 = vpop.f32.mrb[28].mxu1 }
 0x2ba   : > { %v3553_v41 = vpop.f32.mrb[29].mxu0  ;;  %v3575_v48 = vpop.f32.mrb[29].mxu1 }
 0x2bb   : > { %v3554_v47 = vadd.f32 %v3553_v41, %v3552_v39  ;;  %v3555_v29 = vpop.f32.mrb[30].mxu0  ;;  %v3576_v49 = vadd.f32 %v3575_v48, %v3574_v40  ;;  %v3577_v50 = vpop.f32.mrb[30].mxu1 }
 0x2bc   : > { %v3556_v43 = vpop.f32.mrb[31].mxu0  ;;  %v3578_v51 = vpop.f32.mrb[31].mxu1 }
 0x2bd   : > { %v2922_v31 = vadd.f32 %v3554_v47, %v2882_v38 }
 0x2bf   : > { %v2962_v52 = vadd.f32 %v3576_v49, %v2922_v31 }
 0x2c1   : > { %2967 = vst [vmem:[%s281_s15] sm:$0xff] %v2962_v52 }
 0x2c2   : > { %3917 = shalt.err (!%p3914_p4)
}
 0x2c3   : > { %s3918_s16 = scalar_lea.hbm %s4318_s7, 128  ;;  %s3922_s24 = scalar_lea.hbm %s4367_s5, 256 }
 0x2c4   : > { %p3919_p0 = scmp.ne.s32.totalorder %s4318_s7, %s3918_s16  ;;  %p3923_p8 = scmp.lt.u32.totalorder %s4318_s7, %s4367_s5 }
 0x2c5   : > { %p3924_p13 = scmp.lt.u32.totalorder %s3922_s24, %s3918_s16  ;;  %p3926_p10 = scmp.lt.u32.totalorder %s3918_s16, %s4318_s7 }
 0x2c6   : > { %p3920_p9 = pnand %p3919_p0, %p4166_p3 }
 0x2c7   : > { %p3925_p6 = por %p3924_p13, %p3923_p8 }
 0x2c8   : > { %p3921_p11 = pneg %p3920_p9 }
 0x2c9   : > { %p3927_p5 = por %p3926_p10, %p3925_p6 }
 0x2cb   : > { %p3928_p7 = pnand %p3927_p5, %p3921_p11 }
 0x2cd   : > { %3931 = shalt.err (!%p3928_p7)
}
 0x2ce   : > { %3594 = dma.vmem_to_hbm [thread:$0]  (%p4166_p3), %s4320_s6, 128, %s4318_s7, %s2969_s27  }
 0x2cf PF: > { %s2994_s13 = sand.u32 1, %s3966_s18   ;;  %p4385_p12 = scmp.ne.s32.totalorder %s4372_s25, 0 }
 0x2d0   : > { %p4386_p1 = scmp.ge.s32.totalorder %s3978_s21, 2  ;;  %s2995_s15 = scalar_lea.sflag [#allocation5], %s2994_s13 }
 0x2d2   : > { %p3611_p2 = pnand %p4386_p1, %p4385_p12 }
 0x2d4   : > { %3961 = dma.done.wait (!%p3611_p2), %s2995_s15, 128  }
 0x2d5   : > { %3963 = vsyncadd (!%p3611_p2), %s2995_s15, 4294967168  ;;  %p20_p4 = scmp.ge.s32.totalorder %s4153_s14, 4   ;;  %s4387_s18 = smov %s3970_s19 }
 0x2d6   : > { %s4388_s19 = smov %s3974_s20  ;;  %s4389_s20 = smov %s4162_s23 }
 0x2d7   : > { %s4390_s21 = smov %s4153_s14  ;;  %22 = sbr.rel (!%p20_p4) target bundleno = 7 (0x7), region = 97 }
 0x2de   :  { %3000 = vsyncpa [#allocation4], 1 }
 0x2df   :  { %3002 = vsyncpa [#allocation4 + $0x1], 1 }
 0x2e0   :  { %3003 = vsyncpa [#allocation7], 1 }
 0x2e1   :  { %3004 = vsyncpa [#allocation10], 1 }
 0x2e2   :  { %3005 = vsyncpa [#allocation5], 1 }
 0x2e3   :  { %3007 = vsyncpa [#allocation5 + $0x1], 1 }

</bundles_post_ra>
